<compile_context>
chip_gen: v6e
topology: v6e:2x2x1
jax: 0.10.0
libtpu: 0.0.40
codegen_flags: <defaults>
</compile_context>

<pallas_src>
import functools
import math

import jax
import jax.numpy as jnp
from jax.experimental import pallas as pl
from jax.experimental.pallas import tpu as pltpu

K = 7      # conv kernel size
PAD = 3    # conv padding


def _ssa_kernel(bands_ref, bias_ref, rgb_ref, depth_ref, rgbd_ref, out_ref,
                pool_s, *, H, W):
    """bands_ref: VMEM (3, 2*K*W, W) bf16 banded conv weights (resident).
    bias_ref:  SMEM (3,) f32 conv biases.
    rgb/depth/rgbd refs: VMEM (1, CT_i, H, W) channel chunks (bf16 or f32).
    out_ref:   VMEM (1, 1, H, W) f32.
    pool_s:    VMEM (3, 2, H + 2*PAD, W) f32 pre-padded running pools:
               [:, 0] = channel max, [:, 1] = channel sum; data lives in rows
               [PAD, PAD+H), the PAD-row halos stay zero."""
    ci = pl.program_id(1)
    nc = pl.num_programs(1)

    @pl.when(ci == 0)
    def _init():
        pool_s[...] = jnp.zeros_like(pool_s)        # zero halos + sum rows
        for s in range(3):
            pool_s[s, 0, pl.ds(PAD, H), :] = jnp.full((H, W), -jnp.inf,
                                                      jnp.float32)

    # ---- channel max / sum pooling for this chunk (VPU), in place ----------
    for s, ref in enumerate((rgb_ref, depth_ref, rgbd_ref)):
        x = ref[0].astype(jnp.float32)                              # (CT, H, W)
        pool_s[s, 0, pl.ds(PAD, H), :] = jnp.maximum(
            pool_s[s, 0, pl.ds(PAD, H), :], jnp.max(x, axis=0))
        pool_s[s, 1, pl.ds(PAD, H), :] = (
            pool_s[s, 1, pl.ds(PAD, H), :] + jnp.sum(x, axis=0))

    # ---- last chunk: one deep banded matmul (MXU) + fusion + sigmoid -------
    @pl.when(ci == nc - 1)
    def _finalize():
        pooled = pool_s[...].astype(jnp.bfloat16)                   # (3,2,Hp,W)
        # Row-shifted operand; contraction index k = (p*K + dy)*W + j matches
        # the host-built band layout.  One concat, one deep matmul.
        operand = jnp.concatenate(
            [pooled[:, p, dy:dy + H, :] for p in range(2) for dy in range(K)],
            axis=-1)                                                # (3,H,2KW)
        sa = jnp.einsum("shk,skx->shx", operand, bands_ref[...],
                        preferred_element_type=jnp.float32)         # (3, H, W)
        sa1 = sa[0] + bias_ref[0]
        sa2 = sa[1] + bias_ref[1]
        sa3 = sa[2] + bias_ref[2]
        fused = (sa1 + sa2 + 1.0) * sa3        # == SA1*SA3 + SA2*SA3 + SA3
        out_ref[0, 0] = jax.nn.sigmoid(fused)


def _build_bands(conv_w, chans, W):
    """conv_w: (3, 2, K, K).  Returns (3, 2*K*W, W) bf16 banded matrices.

    bands[s, (p*K + dy)*W + j, x] = w[s, p, dy, j - x + PAD] for
    0 <= j - x + PAD < K, else 0.  The avg-pool (p == 1) taps are pre-scaled
    by 1/C_s so the kernel only needs the channel *sum*; column zero-padding
    is implicit in the band structure."""
    w = conv_w.astype(jnp.float32)
    inv_c = jnp.asarray([1.0 / c for c in chans], jnp.float32)        # (3,)
    scale = jnp.stack([jnp.ones(3, jnp.float32), inv_c], axis=1)      # (3, 2)
    w = w * scale[:, :, None, None]                                   # (3,2,K,K)

    j = jnp.arange(W)[:, None]
    x = jnp.arange(W)[None, :]
    dx = j - x + PAD                                                  # (W, W)
    valid = (dx >= 0) & (dx < K)
    g = w[:, :, :, jnp.clip(dx, 0, K - 1)]                            # (3,2,K,W,W)
    g = jnp.where(valid[None, None, None], g, 0.0)
    return g.reshape(3, 2 * K * W, W).astype(jnp.bfloat16)


def _vmem_capacity_bytes():
    try:
        return int(pltpu.get_tpu_info().vmem_capacity_bytes)
    except Exception:
        return 64 << 20          # conservative fallback (v7x per-core VMEM)


def _pick_num_chunks(chans, H, W, itemsize, budget_bytes):
    """Smallest chunk count dividing every stream's C such that one grid
    step's double-buffered input blocks stay under budget_bytes."""
    # TODO(synk): cdiv chunking with a masked channel tail for channel counts
    # that share no useful common divisor.
    g = math.gcd(math.gcd(chans[0], chans[1]), chans[2])
    for nc in range(1, g + 1):
        if g % nc:
            continue
        if sum(2 * (c // nc) * H * W * itemsize for c in chans) <= budget_bytes:
            return nc
    return g


def ssa_forward(rgb, depth, rgbd, conv_w, conv_b):
    """rgb/depth/rgbd: (B, C_i, H, W) NCHW (bf16 recommended, any float ok).
    conv_w: (3, 2, K, K) conv weights, conv_b: (3,) biases.
    Returns (B, 1, H, W) float32."""
    B, C1, H, W = rgb.shape
    _, C2, _, _ = depth.shape
    _, C3, _, _ = rgbd.shape
    assert depth.shape[0] == B and rgbd.shape[0] == B
    assert depth.shape[2:] == (H, W) and rgbd.shape[2:] == (H, W)
    chans = (C1, C2, C3)
    Hp = H + 2 * PAD

    # TODO(synk): if production maps have W < 128, make the last dim
    # lane-dense (transpose or pad once) before this call; W=16 here is only
    # for the unit test.
    itemsize = max(jnp.dtype(rgb.dtype).itemsize,
                   jnp.dtype(depth.dtype).itemsize,
                   jnp.dtype(rgbd.dtype).itemsize)

    bands = _build_bands(conv_w, chans, W)               # (3, 2*K*W, W) bf16
    bias = conv_b.astype(jnp.float32)                    # (3,)

    # Generation-aware VMEM budgeting: resident bands (single copy) + padded
    # pooling scratch + double-buffered output block; spend the rest of ~75%
    # of this chip's VMEM on the channel-chunk double buffers.
    cap = _vmem_capacity_bytes()
    resident = (bands.size * 2                        # bf16 bands, one copy
                + 3 * 2 * Hp * W * 4                  # f32 pooling scratch
                + 2 * H * W * 4                       # double-buffered output
                + (64 << 10))                         # misc slack
    target = cap * 3 // 4
    chunk_budget = max(target - resident, 1 << 20)
    nc = _pick_num_chunks(chans, H, W, itemsize, chunk_budget)
    ct1, ct2, ct3 = C1 // nc, C2 // nc, C3 // nc
    vmem_limit = int(min(cap, resident + chunk_budget + (8 << 20)))

    kernel = functools.partial(_ssa_kernel, H=H, W=W)

    flops = int(B * (2 * 3 * H * (2 * K * W) * W       # one deep banded matmul
                     + 2 * (C1 + C2 + C3) * H * W      # max + sum pooling
                     + 8 * H * W))                     # fusion
    bytes_accessed = int(B * (C1 + C2 + C3) * H * W * itemsize
                         + B * H * W * 4 + bands.size * 2 + 12)

    # TODO(synk): for v7x at B == 1, add a parallel H-row-tile grid axis (with
    # a PAD-row pooled halo) so both TensorCores are used; for W >= ~384 switch
    # the dense (2*K*W, W) bands to a block-banded, column-tiled form.
    return pl.pallas_call(
        kernel,
        out_shape=jax.ShapeDtypeStruct((B, 1, H, W), jnp.float32),
        grid=(B, nc),
        in_specs=[
            pl.BlockSpec(memory_space=pltpu.VMEM),                    # bands
            pl.BlockSpec(memory_space=pltpu.SMEM),                    # biases
            pl.BlockSpec((1, ct1, H, W), lambda b, c: (b, c, 0, 0)),  # rgb
            pl.BlockSpec((1, ct2, H, W), lambda b, c: (b, c, 0, 0)),  # depth
            pl.BlockSpec((1, ct3, H, W), lambda b, c: (b, c, 0, 0)),  # rgbd
        ],
        out_specs=pl.BlockSpec((1, 1, H, W), lambda b, c: (b, 0, 0, 0)),
        scratch_shapes=[
            pltpu.VMEM((3, 2, Hp, W), jnp.float32),   # pre-padded max/sum pools
        ],
        compiler_params=pltpu.CompilerParams(
            dimension_semantics=("parallel", "arbitrary"),
            vmem_limit_bytes=vmem_limit),
        cost_estimate=pl.CostEstimate(
            flops=flops, transcendentals=int(B * H * W),
            bytes_accessed=bytes_accessed),
    )(bands, bias, rgb, depth, rgbd)


def _reference(rgb, depth, rgbd, conv_w, conv_b):
    """Pure-JAX NCHW reference mirroring the PyTorch module (f32)."""
    def pool_cat(x):
        mx = jnp.max(x, axis=1, keepdims=True)
        av = jnp.mean(x, axis=1, keepdims=True)
        return jnp.concatenate([mx, av], axis=1)          # (B, 2, H, W)

    def conv(x2, i):
        y = jax.lax.conv_general_dilated(
            x2, conv_w[i][None].astype(jnp.float32), window_strides=(1, 1),
            padding=((PAD, PAD), (PAD, PAD)),
            dimension_numbers=("NCHW", "OIHW", "NCHW"),
            precision=jax.lax.Precision.HIGHEST)
        return y + conv_b[i]

    sa1 = conv(pool_cat(rgb), 0)
    sa2 = conv(pool_cat(depth), 1)
    sa3 = conv(pool_cat(rgbd), 2)
    return jax.nn.sigmoid(sa1 * sa3 + sa2 * sa3 + sa3)


if __name__ == "__main__":
    key = jax.random.PRNGKey(0)
    k_rgb, k_dep, k_rgbd, k_w, k_b = jax.random.split(key, 5)

    B, C, H, W = 2, 4, 16, 16
    # bf16 inputs: halves the HBM traffic of the mem-bound pooling streams.
    rgb = jax.random.normal(k_rgb, (B, C, H, W), jnp.float32).astype(jnp.bfloat16)
    depth = jax.random.normal(k_dep, (B, C, H, W), jnp.float32).astype(jnp.bfloat16)
    rgbd = jax.random.normal(k_rgbd, (B, C, H, W), jnp.float32).astype(jnp.bfloat16)

    # Synthetic Conv2d(2, 1, 7, padding=3) parameters for the three SA convs.
    conv_w = 0.1 * jax.random.normal(k_w, (3, 2, K, K), jnp.float32)
    conv_b = 0.01 * jax.random.normal(k_b, (3,), jnp.float32)

    out = jax.block_until_ready(ssa_forward(rgb, depth, rgbd, conv_w, conv_b))

    ref = _reference(rgb.astype(jnp.float32), depth.astype(jnp.float32),
                     rgbd.astype(jnp.float32), conv_w, conv_b)
    assert out.shape == (B, 1, H, W)
    err = float(jnp.max(jnp.abs(out - ref)))
    # bf16 bands + bf16 MXU operand introduce ~2^-9 relative rounding on the
    # conv relative to the f32 HIGHEST-precision reference; post-sigmoid this
    # is O(1e-3).  Real indexing/weight bugs produce O(0.1) deviations, so a
    # 4e-3 bound still discriminates sharply.
    assert err < 4e-3, "mismatch vs reference, max abs err = %e" % err

    print("KERNEL_OK")
</pallas_src>

<mosaic_0001>
module attributes {stable_mosaic.version = 11 : i64} {
  func.func @_ssa_kernel(%arg0: i32, %arg1: i32, %arg2: memref<3x224x16xbf16, #tpu.memory_space<vmem>>, %arg3: memref<3xf32, #tpu.memory_space<smem>>, %arg4: memref<1x4x16x16xbf16, #tpu.memory_space<vmem>>, %arg5: memref<1x4x16x16xbf16, #tpu.memory_space<vmem>>, %arg6: memref<1x4x16x16xbf16, #tpu.memory_space<vmem>>, %arg7: memref<1x1x16x16xf32, #tpu.memory_space<vmem>>, %arg8: memref<3x2x22x16xf32, #tpu.memory_space<vmem>>) attributes {dimension_semantics = [#tpu.dimension_semantics<parallel>, #tpu.dimension_semantics<arbitrary>], iteration_bounds = array<i64: 2, 1>, scalar_prefetch = 0 : i64, scratch_operands = 1 : i64, tpu.core_type = #tpu.core_type<tc>, window_params = [{pipeline_mode = #tpu.pipeline_mode<synchronous>, transform_indices = @transform_0, window_bounds = array<i64: 3, 224, 16>}, {transform_indices = @transform_1, window_bounds = array<i64: 3>}, {transform_indices = @transform_2, window_bounds = array<i64: 1, 4, 16, 16>}, {transform_indices = @transform_3, window_bounds = array<i64: 1, 4, 16, 16>}, {transform_indices = @transform_4, window_bounds = array<i64: 1, 4, 16, 16>}, {transform_indices = @transform_5, window_bounds = array<i64: 1, 1, 16, 16>}]} {
    %c0_i32 = arith.constant 0 : i32
    %0 = arith.cmpi eq, %arg1, %c0_i32 : i32
    %1 = arith.extui %0 : i1 to i32
    %c0_i32_0 = arith.constant 0 : i32
    %2 = arith.cmpi ne, %1, %c0_i32_0 : i32
    scf.if %2 {
      %cst_64 = arith.constant 0.000000e+00 : f32
      %57 = vector.broadcast %cst_64 : f32 to vector<3x2x22x16xf32>
      %c0_65 = arith.constant 0 : index
      %c0_66 = arith.constant 0 : index
      %c0_67 = arith.constant 0 : index
      %c0_68 = arith.constant 0 : index
      %58 = vector.load %arg8[%c0_65, %c0_66, %c0_67, %c0_68] : memref<3x2x22x16xf32, #tpu.memory_space<vmem>>, vector<3x2x22x16xf32>
      tpu.vector_store %arg8[%c0_65, %c0_66, %c0_67, %c0_68], %57 {strides = array<i32>} : memref<3x2x22x16xf32, #tpu.memory_space<vmem>>, vector<3x2x22x16xf32>,
      %cst_69 = arith.constant 0xFF800000 : f32
      %59 = vector.broadcast %cst_69 : f32 to vector<16x16xf32>
      %c0_70 = arith.constant 0 : index
      %c0_71 = arith.constant 0 : index
      %c3_72 = arith.constant 3 : index
      %c0_73 = arith.constant 0 : index
      %60 = vector.load %arg8[%c0_70, %c0_71, %c3_72, %c0_73] : memref<3x2x22x16xf32, #tpu.memory_space<vmem>>, vector<1x1x16x16xf32>
      %61 = vector.shape_cast %60 : vector<1x1x16x16xf32> to vector<16x16xf32>
      %62 = vector.shape_cast %59 : vector<16x16xf32> to vector<1x1x16x16xf32>
      tpu.vector_store %arg8[%c0_70, %c0_71, %c3_72, %c0_73], %62 {strides = array<i32>} : memref<3x2x22x16xf32, #tpu.memory_space<vmem>>, vector<1x1x16x16xf32>,
      %cst_74 = arith.constant 0xFF800000 : f32
      %63 = vector.broadcast %cst_74 : f32 to vector<16x16xf32>
      %c1_75 = arith.constant 1 : index
      %c0_76 = arith.constant 0 : index
      %c3_77 = arith.constant 3 : index
      %c0_78 = arith.constant 0 : index
      %64 = vector.load %arg8[%c1_75, %c0_76, %c3_77, %c0_78] : memref<3x2x22x16xf32, #tpu.memory_space<vmem>>, vector<1x1x16x16xf32>
      %65 = vector.shape_cast %64 : vector<1x1x16x16xf32> to vector<16x16xf32>
      %66 = vector.shape_cast %63 : vector<16x16xf32> to vector<1x1x16x16xf32>
      tpu.vector_store %arg8[%c1_75, %c0_76, %c3_77, %c0_78], %66 {strides = array<i32>} : memref<3x2x22x16xf32, #tpu.memory_space<vmem>>, vector<1x1x16x16xf32>,
      %cst_79 = arith.constant 0xFF800000 : f32
      %67 = vector.broadcast %cst_79 : f32 to vector<16x16xf32>
      %c2_80 = arith.constant 2 : index
      %c0_81 = arith.constant 0 : index
      %c3_82 = arith.constant 3 : index
      %c0_83 = arith.constant 0 : index
      %68 = vector.load %arg8[%c2_80, %c0_81, %c3_82, %c0_83] : memref<3x2x22x16xf32, #tpu.memory_space<vmem>>, vector<1x1x16x16xf32>
      %69 = vector.shape_cast %68 : vector<1x1x16x16xf32> to vector<16x16xf32>
      %70 = vector.shape_cast %67 : vector<16x16xf32> to vector<1x1x16x16xf32>
      tpu.vector_store %arg8[%c2_80, %c0_81, %c3_82, %c0_83], %70 {strides = array<i32>} : memref<3x2x22x16xf32, #tpu.memory_space<vmem>>, vector<1x1x16x16xf32>,
    } else {
    }
    %c0 = arith.constant 0 : index
    %c0_1 = arith.constant 0 : index
    %c0_2 = arith.constant 0 : index
    %c0_3 = arith.constant 0 : index
    %3 = vector.load %arg4[%c0, %c0_1, %c0_2, %c0_3] : memref<1x4x16x16xbf16, #tpu.memory_space<vmem>>, vector<1x4x16x16xbf16>
    %4 = vector.shape_cast %3 : vector<1x4x16x16xbf16> to vector<4x16x16xbf16>
    %5 = arith.extf %4 : vector<4x16x16xbf16> to vector<4x16x16xf32>
    %c0_4 = arith.constant 0 : index
    %c0_5 = arith.constant 0 : index
    %c3 = arith.constant 3 : index
    %c0_6 = arith.constant 0 : index
    %6 = vector.load %arg8[%c0_4, %c0_5, %c3, %c0_6] : memref<3x2x22x16xf32, #tpu.memory_space<vmem>>, vector<1x1x16x16xf32>
    %7 = vector.shape_cast %6 : vector<1x1x16x16xf32> to vector<16x16xf32>
    %cst = arith.constant dense<0xFF800000> : vector<16x16xf32>
    %8 = vector.multi_reduction <maximumf>, %5, %cst [0] : vector<4x16x16xf32> to vector<16x16xf32>
    %9 = arith.maximumf %7, %8 : vector<16x16xf32>
    %c0_7 = arith.constant 0 : index
    %c0_8 = arith.constant 0 : index
    %c3_9 = arith.constant 3 : index
    %c0_10 = arith.constant 0 : index
    %10 = vector.load %arg8[%c0_7, %c0_8, %c3_9, %c0_10] : memref<3x2x22x16xf32, #tpu.memory_space<vmem>>, vector<1x1x16x16xf32>
    %11 = vector.shape_cast %10 : vector<1x1x16x16xf32> to vector<16x16xf32>
    %12 = vector.shape_cast %9 : vector<16x16xf32> to vector<1x1x16x16xf32>
    tpu.vector_store %arg8[%c0_7, %c0_8, %c3_9, %c0_10], %12 {strides = array<i32>} : memref<3x2x22x16xf32, #tpu.memory_space<vmem>>, vector<1x1x16x16xf32>,
    %c0_11 = arith.constant 0 : index
    %c1 = arith.constant 1 : index
    %c3_12 = arith.constant 3 : index
    %c0_13 = arith.constant 0 : index
    %13 = vector.load %arg8[%c0_11, %c1, %c3_12, %c0_13] : memref<3x2x22x16xf32, #tpu.memory_space<vmem>>, vector<1x1x16x16xf32>
    %14 = vector.shape_cast %13 : vector<1x1x16x16xf32> to vector<16x16xf32>
    %cst_14 = arith.constant dense<0.000000e+00> : vector<16x16xf32>
    %15 = vector.multi_reduction <add>, %5, %cst_14 [0] : vector<4x16x16xf32> to vector<16x16xf32>
    %16 = arith.addf %14, %15 : vector<16x16xf32>
    %c0_15 = arith.constant 0 : index
    %c1_16 = arith.constant 1 : index
    %c3_17 = arith.constant 3 : index
    %c0_18 = arith.constant 0 : index
    %17 = vector.load %arg8[%c0_15, %c1_16, %c3_17, %c0_18] : memref<3x2x22x16xf32, #tpu.memory_space<vmem>>, vector<1x1x16x16xf32>
    %18 = vector.shape_cast %17 : vector<1x1x16x16xf32> to vector<16x16xf32>
    %19 = vector.shape_cast %16 : vector<16x16xf32> to vector<1x1x16x16xf32>
    tpu.vector_store %arg8[%c0_15, %c1_16, %c3_17, %c0_18], %19 {strides = array<i32>} : memref<3x2x22x16xf32, #tpu.memory_space<vmem>>, vector<1x1x16x16xf32>,
    %c0_19 = arith.constant 0 : index
    %c0_20 = arith.constant 0 : index
    %c0_21 = arith.constant 0 : index
    %c0_22 = arith.constant 0 : index
    %20 = vector.load %arg5[%c0_19, %c0_20, %c0_21, %c0_22] : memref<1x4x16x16xbf16, #tpu.memory_space<vmem>>, vector<1x4x16x16xbf16>
    %21 = vector.shape_cast %20 : vector<1x4x16x16xbf16> to vector<4x16x16xbf16>
    %22 = arith.extf %21 : vector<4x16x16xbf16> to vector<4x16x16xf32>
    %c1_23 = arith.constant 1 : index
    %c0_24 = arith.constant 0 : index
    %c3_25 = arith.constant 3 : index
    %c0_26 = arith.constant 0 : index
    %23 = vector.load %arg8[%c1_23, %c0_24, %c3_25, %c0_26] : memref<3x2x22x16xf32, #tpu.memory_space<vmem>>, vector<1x1x16x16xf32>
    %24 = vector.shape_cast %23 : vector<1x1x16x16xf32> to vector<16x16xf32>
    %cst_27 = arith.constant dense<0xFF800000> : vector<16x16xf32>
    %25 = vector.multi_reduction <maximumf>, %22, %cst_27 [0] : vector<4x16x16xf32> to vector<16x16xf32>
    %26 = arith.maximumf %24, %25 : vector<16x16xf32>
    %c1_28 = arith.constant 1 : index
    %c0_29 = arith.constant 0 : index
    %c3_30 = arith.constant 3 : index
    %c0_31 = arith.constant 0 : index
    %27 = vector.load %arg8[%c1_28, %c0_29, %c3_30, %c0_31] : memref<3x2x22x16xf32, #tpu.memory_space<vmem>>, vector<1x1x16x16xf32>
    %28 = vector.shape_cast %27 : vector<1x1x16x16xf32> to vector<16x16xf32>
    %29 = vector.shape_cast %26 : vector<16x16xf32> to vector<1x1x16x16xf32>
    tpu.vector_store %arg8[%c1_28, %c0_29, %c3_30, %c0_31], %29 {strides = array<i32>} : memref<3x2x22x16xf32, #tpu.memory_space<vmem>>, vector<1x1x16x16xf32>,
    %c1_32 = arith.constant 1 : index
    %c1_33 = arith.constant 1 : index
    %c3_34 = arith.constant 3 : index
    %c0_35 = arith.constant 0 : index
    %30 = vector.load %arg8[%c1_32, %c1_33, %c3_34, %c0_35] : memref<3x2x22x16xf32, #tpu.memory_space<vmem>>, vector<1x1x16x16xf32>
    %31 = vector.shape_cast %30 : vector<1x1x16x16xf32> to vector<16x16xf32>
    %cst_36 = arith.constant dense<0.000000e+00> : vector<16x16xf32>
    %32 = vector.multi_reduction <add>, %22, %cst_36 [0] : vector<4x16x16xf32> to vector<16x16xf32>
    %33 = arith.addf %31, %32 : vector<16x16xf32>
    %c1_37 = arith.constant 1 : index
    %c1_38 = arith.constant 1 : index
    %c3_39 = arith.constant 3 : index
    %c0_40 = arith.constant 0 : index
    %34 = vector.load %arg8[%c1_37, %c1_38, %c3_39, %c0_40] : memref<3x2x22x16xf32, #tpu.memory_space<vmem>>, vector<1x1x16x16xf32>
    %35 = vector.shape_cast %34 : vector<1x1x16x16xf32> to vector<16x16xf32>
    %36 = vector.shape_cast %33 : vector<16x16xf32> to vector<1x1x16x16xf32>
    tpu.vector_store %arg8[%c1_37, %c1_38, %c3_39, %c0_40], %36 {strides = array<i32>} : memref<3x2x22x16xf32, #tpu.memory_space<vmem>>, vector<1x1x16x16xf32>,
    %c0_41 = arith.constant 0 : index
    %c0_42 = arith.constant 0 : index
    %c0_43 = arith.constant 0 : index
    %c0_44 = arith.constant 0 : index
    %37 = vector.load %arg6[%c0_41, %c0_42, %c0_43, %c0_44] : memref<1x4x16x16xbf16, #tpu.memory_space<vmem>>, vector<1x4x16x16xbf16>
    %38 = vector.shape_cast %37 : vector<1x4x16x16xbf16> to vector<4x16x16xbf16>
    %39 = arith.extf %38 : vector<4x16x16xbf16> to vector<4x16x16xf32>
    %c2 = arith.constant 2 : index
    %c0_45 = arith.constant 0 : index
    %c3_46 = arith.constant 3 : index
    %c0_47 = arith.constant 0 : index
    %40 = vector.load %arg8[%c2, %c0_45, %c3_46, %c0_47] : memref<3x2x22x16xf32, #tpu.memory_space<vmem>>, vector<1x1x16x16xf32>
    %41 = vector.shape_cast %40 : vector<1x1x16x16xf32> to vector<16x16xf32>
    %cst_48 = arith.constant dense<0xFF800000> : vector<16x16xf32>
    %42 = vector.multi_reduction <maximumf>, %39, %cst_48 [0] : vector<4x16x16xf32> to vector<16x16xf32>
    %43 = arith.maximumf %41, %42 : vector<16x16xf32>
    %c2_49 = arith.constant 2 : index
    %c0_50 = arith.constant 0 : index
    %c3_51 = arith.constant 3 : index
    %c0_52 = arith.constant 0 : index
    %44 = vector.load %arg8[%c2_49, %c0_50, %c3_51, %c0_52] : memref<3x2x22x16xf32, #tpu.memory_space<vmem>>, vector<1x1x16x16xf32>
    %45 = vector.shape_cast %44 : vector<1x1x16x16xf32> to vector<16x16xf32>
    %46 = vector.shape_cast %43 : vector<16x16xf32> to vector<1x1x16x16xf32>
    tpu.vector_store %arg8[%c2_49, %c0_50, %c3_51, %c0_52], %46 {strides = array<i32>} : memref<3x2x22x16xf32, #tpu.memory_space<vmem>>, vector<1x1x16x16xf32>,
    %c2_53 = arith.constant 2 : index
    %c1_54 = arith.constant 1 : index
    %c3_55 = arith.constant 3 : index
    %c0_56 = arith.constant 0 : index
    %47 = vector.load %arg8[%c2_53, %c1_54, %c3_55, %c0_56] : memref<3x2x22x16xf32, #tpu.memory_space<vmem>>, vector<1x1x16x16xf32>
    %48 = vector.shape_cast %47 : vector<1x1x16x16xf32> to vector<16x16xf32>
    %cst_57 = arith.constant dense<0.000000e+00> : vector<16x16xf32>
    %49 = vector.multi_reduction <add>, %39, %cst_57 [0] : vector<4x16x16xf32> to vector<16x16xf32>
    %50 = arith.addf %48, %49 : vector<16x16xf32>
    %c2_58 = arith.constant 2 : index
    %c1_59 = arith.constant 1 : index
    %c3_60 = arith.constant 3 : index
    %c0_61 = arith.constant 0 : index
    %51 = vector.load %arg8[%c2_58, %c1_59, %c3_60, %c0_61] : memref<3x2x22x16xf32, #tpu.memory_space<vmem>>, vector<1x1x16x16xf32>
    %52 = vector.shape_cast %51 : vector<1x1x16x16xf32> to vector<16x16xf32>
    %53 = vector.shape_cast %50 : vector<16x16xf32> to vector<1x1x16x16xf32>
    tpu.vector_store %arg8[%c2_58, %c1_59, %c3_60, %c0_61], %53 {strides = array<i32>} : memref<3x2x22x16xf32, #tpu.memory_space<vmem>>, vector<1x1x16x16xf32>,
    %c0_i32_62 = arith.constant 0 : i32
    %54 = arith.cmpi eq, %arg1, %c0_i32_62 : i32
    %55 = arith.extui %54 : i1 to i32
    %c0_i32_63 = arith.constant 0 : i32
    %56 = arith.cmpi ne, %55, %c0_i32_63 : i32
    scf.if %56 {
      %c0_64 = arith.constant 0 : index
      %c0_65 = arith.constant 0 : index
      %c0_66 = arith.constant 0 : index
      %c0_67 = arith.constant 0 : index
      %57 = vector.load %arg8[%c0_64, %c0_65, %c0_66, %c0_67] : memref<3x2x22x16xf32, #tpu.memory_space<vmem>>, vector<3x2x22x16xf32>
      %58 = arith.truncf %57 : vector<3x2x22x16xf32> to vector<3x2x22x16xbf16>
      %59 = vector.extract_strided_slice %58 {offsets = [0, 0, 0, 0], sizes = [3, 1, 16, 16], strides = [1, 1, 1, 1]} : vector<3x2x22x16xbf16> to vector<3x1x16x16xbf16>
      %60 = vector.shape_cast %59 : vector<3x1x16x16xbf16> to vector<3x16x16xbf16>
      %61 = vector.extract_strided_slice %58 {offsets = [0, 0, 1, 0], sizes = [3, 1, 16, 16], strides = [1, 1, 1, 1]} : vector<3x2x22x16xbf16> to vector<3x1x16x16xbf16>
      %62 = vector.shape_cast %61 : vector<3x1x16x16xbf16> to vector<3x16x16xbf16>
      %63 = vector.extract_strided_slice %58 {offsets = [0, 0, 2, 0], sizes = [3, 1, 16, 16], strides = [1, 1, 1, 1]} : vector<3x2x22x16xbf16> to vector<3x1x16x16xbf16>
      %64 = vector.shape_cast %63 : vector<3x1x16x16xbf16> to vector<3x16x16xbf16>
      %65 = vector.extract_strided_slice %58 {offsets = [0, 0, 3, 0], sizes = [3, 1, 16, 16], strides = [1, 1, 1, 1]} : vector<3x2x22x16xbf16> to vector<3x1x16x16xbf16>
      %66 = vector.shape_cast %65 : vector<3x1x16x16xbf16> to vector<3x16x16xbf16>
      %67 = vector.extract_strided_slice %58 {offsets = [0, 0, 4, 0], sizes = [3, 1, 16, 16], strides = [1, 1, 1, 1]} : vector<3x2x22x16xbf16> to vector<3x1x16x16xbf16>
      %68 = vector.shape_cast %67 : vector<3x1x16x16xbf16> to vector<3x16x16xbf16>
      %69 = vector.extract_strided_slice %58 {offsets = [0, 0, 5, 0], sizes = [3, 1, 16, 16], strides = [1, 1, 1, 1]} : vector<3x2x22x16xbf16> to vector<3x1x16x16xbf16>
      %70 = vector.shape_cast %69 : vector<3x1x16x16xbf16> to vector<3x16x16xbf16>
      %71 = vector.extract_strided_slice %58 {offsets = [0, 0, 6, 0], sizes = [3, 1, 16, 16], strides = [1, 1, 1, 1]} : vector<3x2x22x16xbf16> to vector<3x1x16x16xbf16>
      %72 = vector.shape_cast %71 : vector<3x1x16x16xbf16> to vector<3x16x16xbf16>
      %73 = vector.extract_strided_slice %58 {offsets = [0, 1, 0, 0], sizes = [3, 1, 16, 16], strides = [1, 1, 1, 1]} : vector<3x2x22x16xbf16> to vector<3x1x16x16xbf16>
      %74 = vector.shape_cast %73 : vector<3x1x16x16xbf16> to vector<3x16x16xbf16>
      %75 = vector.extract_strided_slice %58 {offsets = [0, 1, 1, 0], sizes = [3, 1, 16, 16], strides = [1, 1, 1, 1]} : vector<3x2x22x16xbf16> to vector<3x1x16x16xbf16>
      %76 = vector.shape_cast %75 : vector<3x1x16x16xbf16> to vector<3x16x16xbf16>
      %77 = vector.extract_strided_slice %58 {offsets = [0, 1, 2, 0], sizes = [3, 1, 16, 16], strides = [1, 1, 1, 1]} : vector<3x2x22x16xbf16> to vector<3x1x16x16xbf16>
      %78 = vector.shape_cast %77 : vector<3x1x16x16xbf16> to vector<3x16x16xbf16>
      %79 = vector.extract_strided_slice %58 {offsets = [0, 1, 3, 0], sizes = [3, 1, 16, 16], strides = [1, 1, 1, 1]} : vector<3x2x22x16xbf16> to vector<3x1x16x16xbf16>
      %80 = vector.shape_cast %79 : vector<3x1x16x16xbf16> to vector<3x16x16xbf16>
      %81 = vector.extract_strided_slice %58 {offsets = [0, 1, 4, 0], sizes = [3, 1, 16, 16], strides = [1, 1, 1, 1]} : vector<3x2x22x16xbf16> to vector<3x1x16x16xbf16>
      %82 = vector.shape_cast %81 : vector<3x1x16x16xbf16> to vector<3x16x16xbf16>
      %83 = vector.extract_strided_slice %58 {offsets = [0, 1, 5, 0], sizes = [3, 1, 16, 16], strides = [1, 1, 1, 1]} : vector<3x2x22x16xbf16> to vector<3x1x16x16xbf16>
      %84 = vector.shape_cast %83 : vector<3x1x16x16xbf16> to vector<3x16x16xbf16>
      %85 = vector.extract_strided_slice %58 {offsets = [0, 1, 6, 0], sizes = [3, 1, 16, 16], strides = [1, 1, 1, 1]} : vector<3x2x22x16xbf16> to vector<3x1x16x16xbf16>
      %86 = vector.shape_cast %85 : vector<3x1x16x16xbf16> to vector<3x16x16xbf16>
      %87 = tpu.concatenate %60, %62, %64, %66, %68, %70, %72, %74, %76, %78, %80, %82, %84, %86 in 2 : vector<3x16x16xbf16>, vector<3x16x16xbf16>, vector<3x16x16xbf16>, vector<3x16x16xbf16>, vector<3x16x16xbf16>, vector<3x16x16xbf16>, vector<3x16x16xbf16>, vector<3x16x16xbf16>, vector<3x16x16xbf16>, vector<3x16x16xbf16>, vector<3x16x16xbf16>, vector<3x16x16xbf16>, vector<3x16x16xbf16>, vector<3x16x16xbf16> -> vector<3x16x224xbf16>
      %c0_68 = arith.constant 0 : index
      %c0_69 = arith.constant 0 : index
      %c0_70 = arith.constant 0 : index
      %88 = vector.load %arg2[%c0_68, %c0_69, %c0_70] : memref<3x224x16xbf16, #tpu.memory_space<vmem>>, vector<3x224x16xbf16>
      "tpu.trace_start"() <{level = 10 : i32, message = "shk,skx->shx"}> : () -> ()
      %cst_71 = arith.constant dense<0.000000e+00> : vector<3x16x16xf32>
      %89 = tpu.matmul %87, %88, %cst_71 {dimension_numbers = #tpu.dot_dimension_numbers<[2], [1], [1], [2], [0, 0, 0, 1, 1, 2], [0], [0]>} : vector<3x16x224xbf16>, vector<3x224x16xbf16>, vector<3x16x16xf32> -> vector<3x16x16xf32>
      "tpu.trace_stop"() : () -> ()
      %90 = vector.extract_strided_slice %89 {offsets = [0, 0, 0], sizes = [1, 16, 16], strides = [1, 1, 1]} : vector<3x16x16xf32> to vector<1x16x16xf32>
      %91 = vector.shape_cast %90 : vector<1x16x16xf32> to vector<16x16xf32>
      %c0_72 = arith.constant 0 : index
      %92 = memref.load %arg3[%c0_72] : memref<3xf32, #tpu.memory_space<smem>>
      %93 = vector.broadcast %92 : f32 to vector<16x16xf32>
      %94 = arith.addf %91, %93 : vector<16x16xf32>
      %95 = vector.extract_strided_slice %89 {offsets = [1, 0, 0], sizes = [1, 16, 16], strides = [1, 1, 1]} : vector<3x16x16xf32> to vector<1x16x16xf32>
      %96 = vector.shape_cast %95 : vector<1x16x16xf32> to vector<16x16xf32>
      %c1_73 = arith.constant 1 : index
      %97 = memref.load %arg3[%c1_73] : memref<3xf32, #tpu.memory_space<smem>>
      %98 = vector.broadcast %97 : f32 to vector<16x16xf32>
      %99 = arith.addf %96, %98 : vector<16x16xf32>
      %100 = vector.extract_strided_slice %89 {offsets = [2, 0, 0], sizes = [1, 16, 16], strides = [1, 1, 1]} : vector<3x16x16xf32> to vector<1x16x16xf32>
      %101 = vector.shape_cast %100 : vector<1x16x16xf32> to vector<16x16xf32>
      %c2_74 = arith.constant 2 : index
      %102 = memref.load %arg3[%c2_74] : memref<3xf32, #tpu.memory_space<smem>>
      %103 = vector.broadcast %102 : f32 to vector<16x16xf32>
      %104 = arith.addf %101, %103 : vector<16x16xf32>
      %105 = arith.addf %94, %99 : vector<16x16xf32>
      %cst_75 = arith.constant 1.000000e+00 : f32
      %106 = vector.broadcast %cst_75 : f32 to vector<16x16xf32>
      %107 = arith.addf %105, %106 : vector<16x16xf32>
      %108 = arith.mulf %107, %104 : vector<16x16xf32>
      %109 = arith.negf %108 : vector<16x16xf32>
      %110 = math.exp %109 : vector<16x16xf32>
      %cst_76 = arith.constant 1.000000e+00 : f32
      %111 = vector.broadcast %cst_76 : f32 to vector<16x16xf32>
      %112 = arith.addf %111, %110 : vector<16x16xf32>
      %113 = arith.divf %111, %112 : vector<16x16xf32>
      %c0_77 = arith.constant 0 : index
      %c0_78 = arith.constant 0 : index
      %c0_79 = arith.constant 0 : index
      %c0_80 = arith.constant 0 : index
      %114 = vector.load %arg7[%c0_77, %c0_78, %c0_79, %c0_80] : memref<1x1x16x16xf32, #tpu.memory_space<vmem>>, vector<1x1x16x16xf32>
      %115 = vector.shape_cast %114 : vector<1x1x16x16xf32> to vector<16x16xf32>
      %116 = vector.shape_cast %113 : vector<16x16xf32> to vector<1x1x16x16xf32>
      tpu.vector_store %arg7[%c0_77, %c0_78, %c0_79, %c0_80], %116 {strides = array<i32>} : memref<1x1x16x16xf32, #tpu.memory_space<vmem>>, vector<1x1x16x16xf32>,
    } else {
    }
    return
  }
  func.func @transform_0(%arg0: i32, %arg1: i32) -> (i32, i32, i32) {
    %c0_i32 = arith.constant 0 : i32
    %c0_i32_0 = arith.constant 0 : i32
    %c0_i32_1 = arith.constant 0 : i32
    %c0_i32_2 = arith.constant 0 : i32
    return %c0_i32, %c0_i32_0, %c0_i32_1 : i32, i32, i32
  }
  func.func @transform_1(%arg0: i32, %arg1: i32) -> i32 {
    %c0_i32 = arith.constant 0 : i32
    %c0_i32_0 = arith.constant 0 : i32
    return %c0_i32 : i32
  }
  func.func @transform_2(%arg0: i32, %arg1: i32) -> (i32, i32, i32, i32) {
    %c0_i32 = arith.constant 0 : i32
    %c0_i32_0 = arith.constant 0 : i32
    %c0_i32_1 = arith.constant 0 : i32
    return %arg0, %arg1, %c0_i32, %c0_i32_0 : i32, i32, i32, i32
  }
  func.func @transform_3(%arg0: i32, %arg1: i32) -> (i32, i32, i32, i32) {
    %c0_i32 = arith.constant 0 : i32
    %c0_i32_0 = arith.constant 0 : i32
    %c0_i32_1 = arith.constant 0 : i32
    return %arg0, %arg1, %c0_i32, %c0_i32_0 : i32, i32, i32, i32
  }
  func.func @transform_4(%arg0: i32, %arg1: i32) -> (i32, i32, i32, i32) {
    %c0_i32 = arith.constant 0 : i32
    %c0_i32_0 = arith.constant 0 : i32
    %c0_i32_1 = arith.constant 0 : i32
    return %arg0, %arg1, %c0_i32, %c0_i32_0 : i32, i32, i32, i32
  }
  func.func @transform_5(%arg0: i32, %arg1: i32) -> (i32, i32, i32, i32) {
    %c0_i32 = arith.constant 0 : i32
    %c0_i32_0 = arith.constant 0 : i32
    %c0_i32_1 = arith.constant 0 : i32
    %c0_i32_2 = arith.constant 0 : i32
    return %arg0, %c0_i32, %c0_i32_0, %c0_i32_1 : i32, i32, i32, i32
  }
}

</mosaic_0001>

<bundles_post_ra>
// kernel: tpu_custom_call.1
= control target key start
LH: loop header
LB: loop body
LE: loop exit
PB: predicated region body
PF: predicated region fallthrough
CT: control target
= control target key end

     0   :  { %10 = vsyncpa [#allocation5], 0  ;;  %s2782_s0 = inlined_call_operand.vmem [shape: bf16[3,224,16], index: 0, kind: input, shape index: {}]   ;;  %s2783_s1 = inlined_call_operand.vmem [shape: f32[3], index: 1, kind: input, shape index: {}]   ;;  %s2784_s2 = inlined_call_operand.vmem [shape: bf16[2,4,16,16], index: 2, kind: input, shape index: {}]   ;;  %s2785_s3 = inlined_call_operand.vmem [shape: bf16[2,4,16,16], index: 3, kind: input, shape index: {}]   ;;  %s2786_s4 = inlined_call_operand.vmem [shape: bf16[2,4,16,16], index: 4, kind: input, shape index: {}]   ;;  %s2787_s5 = inlined_call_operand.hbm [shape: f32[2,1,16,16], index: 5, kind: output, shape index: {}]  }
   0x1   :  { %11 = vsyncpa [#allocation4], 0 }
   0x2   :  { %13 = vsyncpa [#allocation4 + $0x1], 0  ;;  %s2024_s18 = smov 0   ;;  %s2026_s19 = smov 0  }
   0x3   :  { %s2028_s20 = smov 0   ;;  %s2030_s21 = smov 0  }
   0x4   :  { %s2032_s22 = smov 0   ;;  %s2034_s23 = smov 0  }
   0x5 LB: > { %s1626_s24 = sadd.s32 4294967295, %s1978_s23   ;;  %s1627_s25 = sadd.s32 4294967294, %s1978_s23   ;;  %s1978_s23 = sphi %s2034_s23, %s19_s23   ;;  %s1974_s22 = sphi %s2032_s22, %s2796_s22   ;;  %s1970_s21 = sphi %s2030_s21, %s2795_s21   ;;  %s1966_s20 = sphi %s2028_s20, %s2794_s20   ;;  %s1962_s19 = sphi %s2026_s19, %s2793_s19   ;;  %s1958_s18 = sphi %s2024_s18, %s2792_s18  }
   0x6   : > { %s31_s26 = sadd.s32 1, %s1974_s22  ;;  %s164_s27 = sadd.s32 1, %s1966_s20 }
   0x7   : > { %p33_p0 = scmp.ge.s32.totalorder %s31_s26, 2  ;;  %p174_p1 = scmp.ne.s32.totalorder %s1966_s20, %s1962_s19 }
   0x8   : > { %p175_p2 = scmp.eq.s32.totalorder %s1626_s24, 1  ;;  %p180_p3 = scmp.ne.s32.totalorder %s1962_s19, %s1958_s18 }
   0x9   : > { %s2798_s26 = smov (%p33_p0, %s31_s26), 0  ;;  %p181_p5 = scmp.eq.s32.totalorder %s1627_s25, 1 }
   0xa   : > { %p2064_p4 = por %p175_p2, %p174_p1  ;;  %s161_s29 = ssub.s32 %s1974_s22, %s2798_s26 }
   0xb   : > { %p1628_p6 = scmp.ge.s32.totalorder %s1978_s23, 1  ;;  %p162_p7 = scmp.eq.s32.totalorder %s161_s29, 0 }
   0xc   : > { %p2071_p8 = por %p181_p5, %p180_p3  ;;  %p188_p9 = scmp.lt.s32.totalorder %s1978_s23, 3 }
   0xd   : > { %s2077_s6 = scalar_select %p162_p7, %s1966_s20, %s164_s27  }
   0xe   : > { %p2079_p10 = pnand %p1628_p6, %p188_p9  ;;  %p2083_p11 = scmp.eq.s32.totalorder %s1626_s24, 0 }
   0xf   : > { %s204_s11 = sshll.u32 %s2783_s1, 4  ;;  %s205_s11 = int_to_ptr.vmem [resolvable:$true] %s204_s11 }
  0x10   : > { %p1761_p12 = pneg %p2079_p10  ;;  %s1883_s12 = scalar_lea.vmem %s205_s11, 16 }
  0x11   : > { %p1884_p0 = scmp.ne.s32.totalorder %s205_s11, %s1883_s12  ;;  %p1891_p5 = scmp.lt.s32.totalorder %s205_s11, %s205_s11 }
  0x12   : > { %p1762_p13 = pnand %p2083_p11, %p1761_p12  ;;  %p1892_p6 = scmp.lt.s32.totalorder %s1883_s12, %s1883_s12 }
  0x14   : > { %p1885_p1 = pneg %p1762_p13  ;;  %p1893_p7 = por %p1892_p6, %p1891_p5 }
  0x16   : > { %p1886_p2 = pnand %p1885_p1, %p1884_p0 }
  0x18   : > { %p1887_p3 = pneg %p1886_p2 }
  0x1a   : > { %p1894_p9 = pnand %p1893_p7, %p1887_p3 }
  0x1c   : > { %1897 = shalt.err (!%p1894_p9)
}
  0x1d   : > { %s1980_s13 = smov [#allocation3]   ;;  %259 = sbr.rel (%p2079_p10) target bundleno = 512 (0x200), region = 40 }
  0x1e   : > { %1764 = dma.vmem_to_smem (!%p1762_p13), %s205_s11, 16, %s1980_s13, [#allocation5]  }
  0x22   : > { %1949 = dma.done.wait (%p2083_p11), [#allocation5], 16  }
  0x23   : > { %1951 = vsyncadd (%p2083_p11), [#allocation5], 4294967280 }
  0x24   : > { %265 = sfence }
  0x25   : > { %p314_p12 = scmp.lt.s32.totalorder %s1970_s21, 1  ;;  %vm351_vm0 = vcmask 130048   ;;  %vm354_vm1 = vcmask 128000   ;;  %v1981_v0 = vmov 0.0   ;;  %v1982_v1 = vmov -inf   ;;  %v1833_v3 = vld [vmem:[%s2782_s0 + $0x38] sm:$0xff]  }
  0x26   : > { %352 = vst.msk [vmem:[#allocation2] sm:$0xff] %vm351_vm0, %v1981_v0  ;;  %353 = vst.msk [vmem:[#allocation2 + $0x8] sm:$0xff] %vm351_vm0, %v1981_v0  ;;  %v1983_v2 = vmov 0   ;;  %v1834_v4 = vld [vmem:[%s2782_s0 + $0x30] sm:$0xff]   ;;  %v1835_v51 = vld [vmem:[%s2782_s0 + $0x28] sm:$0xff]   ;;  %vm685_vm2 = vcmask 1045504  }
  0x27   : > { %355 = vst.msk [vmem:[#allocation2 + $0x10] sm:$0x3f] %vm354_vm1, %v1981_v0  ;;  %358 = vst.msk [vmem:[#allocation2 + $0x28] sm:$0x3f] %vm354_vm1, %v1981_v0  ;;  %s315_s14 = scalar_select %p314_p12, %s1970_s21, 1  ;;  %1152 = vmatprep.subr.bf16.mxu0 %v1983_v2  ;;  %1279 = vmatprep.subr.bf16.mxu1 %v1983_v2  ;;  %v1836_v61 = vld [vmem:[%s2782_s0 + $0x20] sm:$0xff]  }
  0x28   : > { %356 = vst.msk [vmem:[#allocation2 + $0x18] sm:$0xff] %vm351_vm0, %v1981_v0  ;;  %357 = vst.msk [vmem:[#allocation2 + $0x20] sm:$0xff] %vm351_vm0, %v1981_v0  ;;  %1153 = vmatpush1.bf16.msra.mxu0 %v1833_v3  ;;  %vm635_vm3 = vcmask 1046528   ;;  %vm729_vm4 = vcmask 1044480   ;;  %vm586_vm5 = vsmask.f32 7424 }
  0x29   : > { %359 = vst.msk [vmem:[#allocation2 + $0x30] sm:$0xff] %vm351_vm0, %v1981_v0  ;;  %360 = vst.msk [vmem:[#allocation2 + $0x38] sm:$0xff] %vm351_vm0, %v1981_v0  ;;  %s2133_s17 = sshll.u32 %s315_s14, 5  ;;  %1154 = vmatprep.subr.bf16.mxu0 %v1983_v2  ;;  %vm651_vm6 = vsmask.f32 6400  ;;  %s1984_s11 = smov 64  }
  0x2a   : > { %361 = vst.msk [vmem:[#allocation2 + $0x40] sm:$0x3f] %vm354_vm1, %v1981_v0  ;;  %364 = vst.msk [vmem:[#allocation2 + $0x58] sm:$0x3f] %vm354_vm1, %v1981_v0  ;;  %s322_s27 = scalar_lea.vmem %s2784_s2, %s2133_s17  ;;  %s2147_s10 = scalar_lea.vmem %s2785_s3, %s2133_s17  ;;  %vm701_vm7 = vsmask.f32 5376 }
  0x2b   : > { %362 = vst.msk [vmem:[#allocation2 + $0x48] sm:$0xff] %vm351_vm0, %v1981_v0  ;;  %363 = vst.msk [vmem:[#allocation2 + $0x50] sm:$0xff] %vm351_vm0, %v1981_v0  ;;  %v1699_v5 = vld [vmem:[%s322_s27] sm:$0xff]   ;;  %v1746_v6 = vld [vmem:[%s322_s27 + $0x8] sm:$0xff]   ;;  %s1985_s12 = smov 32   ;;  %s1987_s8 = smov 48  }
  0x2c   : > { %365 = vst.msk [vmem:[#allocation2 + $0x60] sm:$0xff] %vm351_vm0, %v1981_v0  ;;  %366 = vst.msk [vmem:[#allocation2 + $0x68] sm:$0xff] %vm351_vm0, %v1981_v0  ;;  %v1747_v7 = vld [vmem:[%s322_s27 + $0x10] sm:$0xff]   ;;  %v1700_v8 = vunpack.c.l.bf16 %v1699_v5  ;;  %v1701_v9 = vunpack.c.h.bf16 %v1699_v5  ;;  %v1704_v10 = vunpack.c.l.bf16 %v1746_v6  ;;  %v1705_v11 = vunpack.c.h.bf16 %v1746_v6  ;;  %v1748_v12 = vld [vmem:[%s322_s27 + $0x18] sm:$0xff]   ;;  %1155 = vmatpush1.bf16.msra.mxu0 %v1834_v4  ;;  %s1986_s27 = smov 96   ;;  %s2322_s15 = scalar_lea.vmem %s2786_s4, %s2133_s17 }
  0x2d   : > { %367 = vst.msk [vmem:[#allocation2 + $0x70] sm:$0x3f] %vm354_vm1, %v1981_v0  ;;  %370 = vst.msk [vmem:[#allocation2 + $0x88] sm:$0x3f] %vm354_vm1, %v1981_v0  ;;  %v1708_v13 = vunpack.c.l.bf16 %v1747_v7  ;;  %v1709_v14 = vunpack.c.h.bf16 %v1747_v7  ;;  %v1712_v15 = vunpack.c.l.bf16 %v1748_v12  ;;  %v1713_v16 = vunpack.c.h.bf16 %v1748_v12  ;;  %1156 = vmatprep.subr.bf16.mxu0 %v1983_v2  ;;  %v2159_v29 = vld [vmem:[%s2147_s10] sm:$0xff]   ;;  %v1749_v40 = vld [vmem:[%s2147_s10 + $0x8] sm:$0xff]  }
  0x2e   : > { %368 = vst.msk [vmem:[#allocation2 + $0x78] sm:$0xff] %vm351_vm0, %v1981_v0  ;;  %369 = vst.msk [vmem:[#allocation2 + $0x80] sm:$0xff] %vm351_vm0, %v1981_v0  ;;  %v398_v17 = vsel %vm351_vm0, %v1700_v8, -inf  ;;  %v399_v18 = vsel %vm351_vm0, %v1704_v10, -inf  ;;  %v405_v19 = vsel %vm351_vm0, %v1701_v9, -inf  ;;  %v406_v20 = vsel %vm351_vm0, %v1705_v11, -inf }
  0x2f   : > { %371 = vst.msk [vmem:[#allocation2 + $0x3] sm:$0xff] %vm351_vm0, %v1982_v1  ;;  %372 = vst.msk [vmem:[#allocation2 + $0xb] sm:$0xff] %vm351_vm0, %v1982_v1  ;;  %v400_v21 = vsel %vm351_vm0, %v1708_v13, -inf  ;;  %v402_v22 = vsel %vm351_vm0, %v1712_v15, -inf  ;;  %v407_v23 = vsel %vm351_vm0, %v1709_v14, -inf  ;;  %v409_v24 = vsel %vm351_vm0, %v1713_v16, -inf }
  0x30   : > { %374 = vst.msk [vmem:[#allocation2 + $0x33] sm:$0xff] %vm351_vm0, %v1982_v1  ;;  %375 = vst.msk [vmem:[#allocation2 + $0x3b] sm:$0xff] %vm351_vm0, %v1982_v1  ;;  %v401_v25 = vmax.f32 %v398_v17, %v400_v21  ;;  %v403_v26 = vmax.f32 %v399_v18, %v402_v22  ;;  %v408_v27 = vmax.f32 %v405_v19, %v407_v23  ;;  %v419_v32 = vsel %vm351_vm0, %v1700_v8, 0.0  ;;  %v2168_v41 = vld [vmem:[%s2147_s10 + $0x10] sm:$0xff]   ;;  %v2175_v46 = vld [vmem:[%s2147_s10 + $0x18] sm:$0xff]   ;;  %s1988_s16 = smov 16  }
  0x31   : > { %377 = vst.msk [vmem:[#allocation2 + $0x63] sm:$0xff] %vm351_vm0, %v1982_v1  ;;  %378 = vst.msk [vmem:[#allocation2 + $0x6b] sm:$0xff] %vm351_vm0, %v1982_v1  ;;  %v410_v28 = vmax.f32 %v406_v20, %v409_v24  ;;  %v420_v33 = vsel %vm351_vm0, %v1704_v10, 0.0  ;;  %v422_v34 = vsel %vm351_vm0, %v1708_v13, 0.0  ;;  %v424_v35 = vsel %vm351_vm0, %v1712_v15, 0.0  ;;  %v417_v52 = vld [vmem:[#allocation2 + $0x1b] sm:$0xff]  ;;  %1157 = vmatpush1.bf16.msra.mxu0 %v1835_v51 }
  0x32   : > { %v404_v36 = vmax.f32 %v401_v25, %v403_v26  ;;  %v421_v38 = vadd.f32 %v420_v33, %v419_v32  ;;  %v426_v39 = vsel %vm351_vm0, %v1701_v9, 0.0  ;;  %v427_v42 = vsel %vm351_vm0, %v1705_v11, 0.0  ;;  %v418_v62 = vld [vmem:[#allocation2 + $0x23] sm:$0xff]  ;;  %1158 = vmatprep.subr.bf16.mxu0 %v1983_v2  ;;  %v1837_v13 = vld [vmem:[%s2782_s0 + $0x18] sm:$0xff]   ;;  %s1989_s10 = smov 80   ;;  %s1990_s24 = smov 112  }
  0x33   : > { %v411_v37 = vmax.f32 %v408_v27, %v410_v28  ;;  %v429_v43 = vsel %vm351_vm0, %v1709_v14, 0.0  ;;  %v431_v44 = vsel %vm351_vm0, %v1713_v16, 0.0  ;;  %v1716_v45 = vunpack.c.l.bf16 %v2159_v29  ;;  %v1842_v22 = vld [vmem:[%s2782_s0 + $0xa8] sm:$0xff]   ;;  %v1838_v27 = vld [vmem:[%s2782_s0 + $0x10] sm:$0xff]   ;;  %s1685_s25 = sld [smem:[#allocation3 + $0x1]]  ;;  %s1991_s14 = smov [#allocation6]  }
  0x34   : > { %v423_v49 = vadd.f32 %v422_v34, %v421_v38  ;;  %v428_v50 = vadd.f32 %v427_v42, %v426_v39  ;;  %v1717_v53 = vunpack.c.h.bf16 %v2159_v29  ;;  %v1720_v54 = vunpack.c.l.bf16 %v1749_v40  ;;  %1280 = vmatpush1.bf16.msra.mxu1 %v1842_v22  ;;  %v1839_v51 = vld [vmem:[%s2782_s0 + $0x8] sm:$0xff]   ;;  %s1447_s29 = sld [smem:[#allocation3]] }
  0x35   : > { %v1721_v55 = vunpack.c.h.bf16 %v1749_v40  ;;  %v1724_v56 = vunpack.c.l.bf16 %v2168_v41  ;;  %v1725_v59 = vunpack.c.h.bf16 %v2168_v41  ;;  %v1728_v60 = vunpack.c.l.bf16 %v2175_v46  ;;  %1159 = vmatpush1.bf16.msra.mxu0 %v1836_v61  ;;  %1281 = vmatprep.subr.bf16.mxu1 %v1983_v2 }
  0x36   : > { %v395_v30 = vld [vmem:[#allocation2 + $0x3] sm:$0xff]  ;;  %v396_v31 = vld [vmem:[#allocation2 + $0xb] sm:$0xff]  ;;  %v425_v57 = vadd.f32 %v424_v35, %v423_v49  ;;  %v430_v58 = vadd.f32 %v429_v43, %v428_v50  ;;  %v1729_v63 = vunpack.c.h.bf16 %v2175_v46  ;;  %v456_v0 = vsel %vm351_vm0, %v1716_v45, -inf  ;;  %1160 = vmatprep.subr.bf16.mxu0 %v1983_v2 }
  0x37   : > { %v412_v47 = vmax.f32 %v395_v30, %v404_v36  ;;  %v413_v48 = vmax.f32 %v396_v31, %v411_v37  ;;  %v457_v1 = vsel %vm351_vm0, %v1720_v54, -inf  ;;  %v458_v3 = vsel %vm351_vm0, %v1724_v56, -inf  ;;  %v454_v6 = vld [vmem:[#allocation2 + $0x33] sm:$0xff]  ;;  %v455_v18 = vld [vmem:[#allocation2 + $0x3b] sm:$0xff] }
  0x38   : > { %v432_v4 = vadd.f32 %v431_v44, %v430_v58  ;;  %v433_v5 = vadd.f32 %v425_v57, %v417_v52  ;;  %v459_v7 = vmax.f32 %v456_v0, %v458_v3  ;;  %v460_v8 = vsel %vm351_vm0, %v1728_v60, -inf  ;;  %v1844_v37 = vld [vmem:[%s2782_s0 + $0xa0] sm:$0xff]  }
  0x39   : > { %414 = vst.msk [vmem:[#allocation2 + $0x3] sm:$0xff] %vm351_vm0, %v412_v47  ;;  %415 = vst.msk [vmem:[#allocation2 + $0xb] sm:$0xff] %vm351_vm0, %v413_v48  ;;  %v461_v9 = vmax.f32 %v457_v1, %v460_v8  ;;  %v463_v10 = vsel %vm351_vm0, %v1717_v53, -inf  ;;  %v464_v11 = vsel %vm351_vm0, %v1721_v55, -inf  ;;  %v465_v12 = vsel %vm351_vm0, %v1725_v59, -inf  ;;  %1161 = vmatpush1.bf16.msra.mxu0 %v1837_v13  ;;  %1282 = vmatpush1.bf16.msra.mxu1 %v1844_v37  ;;  %v1840_v13 = vld [vmem:[%s2782_s0] sm:$0xff]  }
  0x3a   : > { %v434_v14 = vadd.f32 %v432_v4, %v418_v62  ;;  %435 = vst.msk [vmem:[#allocation2 + $0x1b] sm:$0xff] %vm351_vm0, %v433_v5  ;;  %v466_v15 = vmax.f32 %v463_v10, %v465_v12  ;;  %v467_v16 = vsel %vm351_vm0, %v1729_v63, -inf  ;;  %v477_v17 = vsel %vm351_vm0, %v1716_v45, 0.0  ;;  %1162 = vmatprep.subr.bf16.mxu0 %v1983_v2  ;;  %1283 = vmatprep.subr.bf16.mxu1 %v1983_v2  ;;  %v1846_v4 = vld [vmem:[%s2782_s0 + $0x98] sm:$0xff]  }
  0x3b   : > { %v462_v19 = vmax.f32 %v459_v7, %v461_v9  ;;  %v468_v20 = vmax.f32 %v464_v11, %v467_v16  ;;  %v478_v21 = vsel %vm351_vm0, %v1720_v54, 0.0  ;;  %v480_v24 = vsel %vm351_vm0, %v1724_v56, 0.0 }
  0x3c   : > { %436 = vst.msk [vmem:[#allocation2 + $0x23] sm:$0xff] %vm351_vm0, %v434_v14  ;;  %v479_v23 = vadd.f32 %v478_v21, %v477_v17  ;;  %v484_v25 = vsel %vm351_vm0, %v1717_v53, 0.0  ;;  %v485_v26 = vsel %vm351_vm0, %v1721_v55, 0.0  ;;  %v2219_v33 = vsel %vm351_vm0, %v1728_v60, 0.0  ;;  %v1848_v14 = vld [vmem:[%s2782_s0 + $0x90] sm:$0xff]  }
  0x3d   : > { %v469_v31 = vmax.f32 %v466_v15, %v468_v20  ;;  %v470_v32 = vmax.f32 %v454_v6, %v462_v19  ;;  %v2226_v36 = vsel %vm351_vm0, %v1725_v59, 0.0  ;;  %v2235_v40 = vadd.f32 %v485_v26, %v484_v25  ;;  %1163 = vmatpush1.bf16.msra.mxu0 %v1838_v27  ;;  %1284 = vmatpush1.bf16.msra.mxu1 %v1846_v4 }
  0x3e   : > { %v2233_v39 = vadd.f32 %v480_v24, %v479_v23  ;;  %1164 = vmatprep.subr.bf16.mxu0 %v1983_v2  ;;  %v1841_v24 = vld [vmem:[%s2782_s0 + $0x68] sm:$0xff]   ;;  %1285 = vmatprep.subr.bf16.mxu1 %v1983_v2  ;;  %vm904_vm8 = vcmask 261120   ;;  %vm911_vm9 = vcmask 392192   ;;  %vm918_vm10 = vcmask 523264  }
  0x3f   : > { %v471_v38 = vmax.f32 %v455_v18, %v469_v31  ;;  %472 = vst.msk [vmem:[#allocation2 + $0x33] sm:$0xff] %vm351_vm0, %v470_v32  ;;  %vm925_vm11 = vcmask 654336   ;;  %vm932_vm12 = vcmask 785408   ;;  %vm939_vm13 = vcmask 916480  }
  0x40   : > { %v556_v28 = vld [vmem:[#allocation2] sm:$0xff]  ;;  %v557_v29 = vld [vmem:[#allocation2 + $0x8] sm:$0xff]  ;;  %v558_v30 = vld [vmem:[#allocation2 + $0x10] sm:$0x3f] }
  0x41   : > { %v2221_v34 = vpack.c.bf16 %v557_v29, %v556_v28  ;;  %v2223_v35 = vpack.c.bf16 %v558_v30, %v558_v30  ;;  %v559_v48 = vld [vmem:[#allocation2 + $0x18] sm:$0xff]  ;;  %473 = vst.msk [vmem:[#allocation2 + $0x3b] sm:$0xff] %vm351_vm0, %v471_v38  ;;  %1165 = vmatpush1.bf16.msra.mxu0 %v1839_v51  ;;  %1286 = vmatpush1.bf16.msra.mxu1 %v1848_v14  ;;  %v1850_v38 = vld [vmem:[%s2782_s0 + $0x88] sm:$0xff]  }
  0x42   : > { %1166 = vmatprep.subr.bf16.mxu0 %v1983_v2  ;;  %1287 = vmatprep.subr.bf16.mxu1 %v1983_v2 }
  0x43   : > { %v686_v41 = vrot.slane %v2221_v34, 2  ;;  %v687_v42 = vrot.slane %v2223_v35, 2  ;;  %v636_v43 = vrot.slane %v2221_v34, 1  ;;  %v637_v44 = vrot.slane %v2223_v35, 1  ;;  %v560_v57 = vld [vmem:[#allocation2 + $0x20] sm:$0xff] }
  0x44   : > { %v730_v45 = vrot.slane %v2221_v34, 3  ;;  %v731_v47 = vrot.slane %v2223_v35, 3  ;;  %v2245_v49 = vshrl.u32 %v2221_v34, 16  ;;  %v2248_v50 = vshll.u32 %v2221_v34, 16  ;;  %v561_v58 = vld [vmem:[#allocation2 + $0x28] sm:$0x3f] }
  0x45   : > { %v688_v52 = vsel %vm685_vm2, %v686_v41, %v687_v42  ;;  %v638_v53 = vsel %vm635_vm3, %v636_v43, %v637_v44  ;;  %v2257_v54 = vshll.u32 %v2223_v35, 16  ;;  %v655_v55 = vshrl.u32 %v2223_v35, 16  ;;  %1167 = vmatpush1.bf16.msra.mxu0 %v1840_v13  ;;  %1288 = vmatpush1.bf16.msra.mxu1 %v1850_v38 }
  0x46   : > { %695 = vrot.lane.b32.xlu1 %v688_v52, %s1984_s11  ;;  %645 = vrot.lane.b32.xlu0 %v638_v53, %s1985_s12  ;;  %v732_v56 = vsel %vm729_vm4, %v730_v45, %v731_v47  ;;  %v592_v59 = vrot.slane %v2248_v50, 1  ;;  %v652_v60 = vrot.slane %v2245_v49, 1  ;;  %v653_v61 = vrot.slane %v2248_v50, 2  ;;  %v562_v23 = vld [vmem:[#allocation2 + $0x30] sm:$0xff] }
  0x47   : > { %v2267_v62 = vpack.c.bf16 %v560_v57, %v559_v48  ;;  %v2269_v0 = vpack.c.bf16 %v561_v58, %v561_v58  ;;  %v597_v1 = vrot.slane %v2257_v54, 1  ;;  %v657_v3 = vrot.slane %v655_v55, 1  ;;  %1172 = vmatprep.subr.bf16.mxu0 %v1983_v2  ;;  %v475_v58 = vld [vmem:[#allocation2 + $0x4b] sm:$0xff]  ;;  %1289 = vmatprep.subr.bf16.mxu1 %v1983_v2 }
  0x48   : > { %v593_v5 = vor.u32 %v592_v59, %v2245_v49  ;;  %v654_v6 = vor.u32 %v653_v61, %v652_v60  ;;  %v658_v7 = vrot.slane %v2257_v54, 2  ;;  %v702_v8 = vrot.slane %v2245_v49, 2  ;;  %v563_v29 = vld [vmem:[#allocation2 + $0x38] sm:$0xff]  ;;  %v564_v30 = vld [vmem:[#allocation2 + $0x40] sm:$0x3f] }
  0x49   : > { %v841_v9 = vrot.slane %v2267_v62, 2  ;;  %v842_v10 = vrot.slane %v2269_v0, 2  ;;  %v793_v11 = vrot.slane %v2267_v62, 1  ;;  %v794_v12 = vrot.slane %v2269_v0, 1  ;;  %v2346_v60 = vld [vmem:[%s2322_s15] sm:$0xff]   ;;  %1173 = vmatpush2.bf16.msra.mxu0 %v1841_v24 }
  0x4a   : > { %739 = vrot.lane.b32.xlu1 %v732_v56, %s1986_s27  ;;  %v598_v15 = vsel %vm586_vm5, %v593_v5, %v597_v1  ;;  %v659_v16 = vor.u32 %v658_v7, %v657_v3  ;;  %v2292_v17 = vshrl.u32 %v2267_v62, 16  ;;  %v2295_v18 = vshll.u32 %v2267_v62, 16  ;;  %v2356_v3 = vld [vmem:[%s2322_s15 + $0x8] sm:$0xff]   ;;  %1174 = vmatprep.subr.bf16.mxu0 %v1983_v2  ;;  %v2371_v7 = vld [vmem:[%s2322_s15 + $0x10] sm:$0xff]  }
  0x4b   : > { %v843_v19 = vsel %vm685_vm2, %v841_v9, %v842_v10  ;;  %v795_v20 = vsel %vm635_vm3, %v793_v11, %v794_v12  ;;  %v2301_v21 = vshll.u32 %v2269_v0, 16  ;;  %v811_v22 = vshrl.u32 %v2269_v0, 16  ;;  %v2379_v11 = vld [vmem:[%s2322_s15 + $0x18] sm:$0xff]   ;;  %s1902_s15 = sshll.u32 %s1991_s14, 4  ;;  %s1903_s15 = int_to_ptr.vmem [resolvable:$false] %s1902_s15 }
  0x4c   : > { %850 = vrot.lane.b32.xlu0 %v843_v19, %s1987_s8  ;;  %v660_v25 = vsel %vm651_vm6, %v654_v6, %v659_v16  ;;  %v808_v26 = vrot.slane %v2292_v17, 1  ;;  %v809_v27 = vrot.slane %v2295_v18, 2  ;;  %v703_v28 = vrot.slane %v2248_v50, 3  ;;  %v476_v6 = vld [vmem:[#allocation2 + $0x53] sm:$0xff]  ;;  %s1904_s17 = scalar_lea.vmem %s1903_s15, 512 }
  0x4d   : > { %v813_v31 = vrot.slane %v811_v22, 1  ;;  %v814_v32 = vrot.slane %v2301_v21, 2  ;;  %v705_v35 = vrot.slane %v655_v55, 2  ;;  %v706_v37 = vrot.slane %v2257_v54, 3  ;;  %v1843_v54 = vld [vmem:[%s2782_s0 + $0x60] sm:$0xff]   ;;  %v1845_v12 = vld [vmem:[%s2782_s0 + $0x58] sm:$0xff]  }
  0x4e   : > { %802 = vrot.lane.b32.xlu1 %v795_v20, %s1988_s16  ;;  %v810_v41 = vor.u32 %v809_v27, %v808_v26  ;;  %v704_v42 = vor.u32 %v703_v28, %v702_v8  ;;  %v856_v43 = vrot.slane %v2292_v17, 2  ;;  %v857_v44 = vrot.slane %v2295_v18, 3  ;;  %1175 = vmatpush2.bf16.msra.mxu0 %v1843_v54  ;;  %v1847_v26 = vld [vmem:[%s2782_s0 + $0x50] sm:$0xff]   ;;  %v1853_v27 = vld [vmem:[%s2782_s0 + $0x78] sm:$0xff]  }
  0x4f   : > { %v815_v45 = vor.u32 %v814_v32, %v813_v31  ;;  %v707_v47 = vor.u32 %v706_v37, %v705_v35  ;;  %v859_v48 = vrot.slane %v811_v22, 2  ;;  %v860_v49 = vrot.slane %v2301_v21, 3  ;;  %1176 = vmatprep.subr.bf16.mxu0 %v1983_v2 }
  0x50   : > { %623 = vrot.lane.b32.xlu0 %v598_v15, %s1988_s16  ;;  %v858_v50 = vor.u32 %v857_v44, %v856_v43  ;;  %v883_v51 = vrot.slane %v2267_v62, 3  ;;  %v2332_v52 = vpack.c.bf16 %v563_v29, %v562_v23  ;;  %v489_v53 = vsel %vm351_vm0, %v1729_v63, 0.0 }
  0x51   : > { %v816_v55 = vsel %vm651_vm6, %v810_v41, %v815_v45  ;;  %v861_v56 = vor.u32 %v860_v49, %v859_v48  ;;  %v2341_v57 = vpack.c.bf16 %v564_v30, %v564_v30  ;;  %v488_v59 = vadd.f32 %v2226_v36, %v2235_v40  ;;  %v1852_v36 = vld [vmem:[%s2782_s0 + $0x80] sm:$0xff]   ;;  %v1855_v49 = vld [vmem:[%s2782_s0 + $0x70] sm:$0xff]  }
  0x52   : > { %679 = vrot.lane.b32.xlu1 %v660_v25, %s1987_s8  ;;  %v708_v46 = vsel %vm701_vm7, %v704_v42, %v707_v47  ;;  %v884_v63 = vrot.slane %v2269_v0, 3  ;;  %v639_v61 = vrot.slane %v2332_v52, 1  ;;  %v2353_v1 = vshll.u32 %v2332_v52, 16  ;;  %1290 = vmatpush1.bf16.msra.mxu1 %v1852_v36  ;;  %v513_v36 = vld [vmem:[#allocation2 + $0x6b] sm:$0xff] }
  0x53   : > { %v640_v40 = vrot.slane %v2341_v57, 1  ;;  %v2364_v4 = vshrl.u32 %v2332_v52, 16  ;;  %v2367_v0 = vshll.u32 %v2341_v57, 16  ;;  %v664_v5 = vshrl.u32 %v2341_v57, 16  ;;  %1291 = vmatprep.subr.bf16.mxu1 %v1983_v2  ;;  %1177 = vmatpush2.bf16.msra.mxu0 %v1845_v12 }
  0x54   : > { %835 = vrot.lane.b32.xlu0 %v816_v55, %s1985_s12  ;;  %v862_v8 = vsel %vm701_vm7, %v858_v50, %v861_v56  ;;  %v604_v9 = vrot.slane %v2353_v1, 1  ;;  %v483_v10 = vadd.f32 %v2219_v33, %v2233_v39  ;;  %v662_v14 = vrot.slane %v2353_v1, 2  ;;  %1178 = vmatprep.subr.bf16.mxu0 %v1983_v2  ;;  %v512_v50 = vld [vmem:[#allocation2 + $0x63] sm:$0xff] }
  0x55   : > { %v661_v13 = vrot.slane %v2364_v4, 1  ;;  %v666_v15 = vrot.slane %v664_v5, 1  ;;  %v667_v16 = vrot.slane %v2367_v0, 2  ;;  %v490_v33 = vadd.f32 %v489_v53, %v488_v59 }
  0x56   : > { %723 = vrot.lane.b32.xlu1 %v708_v46, %s1989_s10  ;;  %v491_v39 = vadd.f32 %v483_v10, %v475_v58  ;;  %v1732_v19 = vunpack.c.l.bf16 %v2346_v60  ;;  %v1733_v20 = vunpack.c.h.bf16 %v2346_v60  ;;  %v885_v22 = vsel %vm729_vm4, %v883_v51, %v884_v63  ;;  %1292 = vmatpush1.bf16.msra.mxu1 %v1853_v27  ;;  %v1849_v46 = vld [vmem:[%s2782_s0 + $0x48] sm:$0xff]  }
  0x57   : > { %v641_v23 = vsel %vm635_vm3, %v639_v61, %v640_v40  ;;  %v609_v24 = vrot.slane %v2367_v0, 1  ;;  %v1736_v25 = vunpack.c.l.bf16 %v2356_v3  ;;  %v605_v28 = vor.u32 %v604_v9, %v2364_v4  ;;  %1293 = vmatprep.subr.bf16.mxu1 %v1983_v2  ;;  %1179 = vmatpush2.bf16.msra.mxu0 %v1847_v26 }
  0x58   : > { %877 = vrot.lane.b32.xlu0 %v862_v8, %s1984_s11  ;;  %v492_v29 = vadd.f32 %v490_v33, %v476_v6  ;;  %493 = vst.msk [vmem:[#allocation2 + $0x4b] sm:$0xff] %vm351_vm0, %v491_v39  ;;  %v1737_v30 = vunpack.c.h.bf16 %v2356_v3  ;;  %v1740_v31 = vunpack.c.l.bf16 %v2371_v7  ;;  %v663_v32 = vor.u32 %v662_v14, %v661_v13  ;;  %1180 = vmatprep.subr.bf16.mxu0 %v1983_v2  ;;  %v1857_v14 = vld [vmem:[%s2782_s0 + $0xd8] sm:$0xff]  }
  0x59   : > { %v668_v35 = vor.u32 %v667_v16, %v666_v15  ;;  %v1741_v37 = vunpack.c.h.bf16 %v2371_v7  ;;  %v1744_v38 = vunpack.c.l.bf16 %v2379_v11  ;;  %v1745_v41 = vunpack.c.h.bf16 %v2379_v11 }
  0x5a   : > { %748 = vrot.lane.b32.xlu1 %v2267_v62, %s1990_s24  ;;  %494 = vst.msk [vmem:[#allocation2 + $0x53] sm:$0xff] %vm351_vm0, %v492_v29  ;;  %v514_v42 = vsel %vm351_vm0, %v1732_v19, -inf  ;;  %v515_v43 = vsel %vm351_vm0, %v1736_v25, -inf  ;;  %v516_v44 = vsel %vm351_vm0, %v1740_v31, -inf  ;;  %v521_v48 = vsel %vm351_vm0, %v1733_v20, -inf  ;;  %1294 = vmatpush1.bf16.msra.mxu1 %v1855_v49  ;;  %v1859_v29 = vld [vmem:[%s2782_s0 + $0xd0] sm:$0xff]  }
  0x5b   : > { %v517_v45 = vmax.f32 %v514_v42, %v516_v44  ;;  %v518_v47 = vsel %vm351_vm0, %v1744_v38, -inf  ;;  %v522_v62 = vsel %vm351_vm0, %v1737_v30, -inf  ;;  %v523_v53 = vsel %vm351_vm0, %v1741_v37, -inf  ;;  %1181 = vmatpush2.bf16.msra.mxu0 %v1849_v46  ;;  %1299 = vmatprep.subr.bf16.mxu1 %v1983_v2 }
  0x5c   : > { %892 = vrot.lane.b32.xlu0 %v885_v22, %s1989_s10  ;;  %v519_v51 = vmax.f32 %v515_v43, %v518_v47  ;;  %v525_v54 = vsel %vm351_vm0, %v1745_v41, -inf  ;;  %v610_v55 = vsel %vm586_vm5, %v605_v28, %v609_v24  ;;  %v689_v56 = vrot.slane %v2332_v52, 2  ;;  %1182 = vmatprep.subr.bf16.mxu0 %v1983_v2 }
  0x5d   : > { %v524_v58 = vmax.f32 %v521_v48, %v523_v53  ;;  %v526_v59 = vmax.f32 %v522_v62, %v525_v54  ;;  %v669_v63 = vsel %vm651_vm6, %v663_v32, %v668_v35  ;;  %v690_v61 = vrot.slane %v2341_v57, 2  ;;  %v533_v54 = vld [vmem:[#allocation2 + $0x7b] sm:$0xff] }
  0x5e   : > { %647 = vrot.lane.b32.xlu1 %v641_v23, %s1985_s12  ;;  %v520_v40 = vmax.f32 %v517_v45, %v519_v51  ;;  %v709_v6 = vrot.slane %v2364_v4, 2  ;;  %v710_v10 = vrot.slane %v2353_v1, 3  ;;  %v535_v12 = vsel %vm351_vm0, %v1732_v19, 0.0  ;;  %v1851_v19 = vld [vmem:[%s2782_s0 + $0x40] sm:$0xff]   ;;  %1300 = vmatpush2.bf16.msra.mxu1 %v1857_v14 }
  0x5f   : > { %v565_v8 = vld [vmem:[#allocation2 + $0x48] sm:$0xff]  ;;  %v527_v9 = vmax.f32 %v524_v58, %v526_v59  ;;  %v536_v13 = vsel %vm351_vm0, %v1736_v25, 0.0  ;;  %v712_v22 = vrot.slane %v664_v5, 2  ;;  %v538_v1 = vsel %vm351_vm0, %v1740_v31, 0.0  ;;  %1301 = vmatprep.subr.bf16.mxu1 %v1983_v2  ;;  %1183 = vmatpush2.bf16.msra.mxu0 %v1851_v19  ;;  %v1863_v4 = vld [vmem:[%s2782_s0 + $0xc0] sm:$0xff]  }
  0x60   : > { %625 = vrot.lane.b32.xlu0 %v610_v55, %s1988_s16  ;;  %v528_v15 = vmax.f32 %v512_v50, %v520_v40  ;;  %v537_v23 = vadd.f32 %v536_v13, %v535_v12  ;;  %v691_v5 = vsel %vm685_vm2, %v689_v56, %v690_v61  ;;  %v713_v26 = vrot.slane %v2367_v0, 3  ;;  %1406 = vmatprep.subr.bf16.mxu0 %v1983_v2  ;;  %v534_v12 = vld [vmem:[#allocation2 + $0x83] sm:$0xff] }
  0x61   : > { %v566_v16 = vld [vmem:[#allocation2 + $0x50] sm:$0xff]  ;;  %v567_v33 = vld [vmem:[#allocation2 + $0x58] sm:$0x3f]  ;;  %v529_v39 = vmax.f32 %v513_v36, %v527_v9  ;;  %v540_v27 = vsel %vm351_vm0, %v1744_v38, 0.0  ;;  %v542_v28 = vsel %vm351_vm0, %v1733_v20, 0.0  ;;  %v543_v42 = vsel %vm351_vm0, %v1737_v30, 0.0 }
  0x62   : > { %681 = vrot.lane.b32.xlu1 %v669_v63, %s1987_s8  ;;  %v2463_v24 = vpack.c.bf16 %v566_v16, %v565_v8  ;;  %v2465_v25 = vpack.c.bf16 %v567_v33, %v567_v33  ;;  %530 = vst.msk [vmem:[#allocation2 + $0x63] sm:$0xff] %vm351_vm0, %v528_v15  ;;  %v539_v38 = vadd.f32 %v538_v1, %v537_v23  ;;  %v759_v47 = vrot.slane %v2295_v18, 1  ;;  %v1861_v18 = vld [vmem:[%s2782_s0 + $0xc8] sm:$0xff]   ;;  %v1865_v23 = vld [vmem:[%s2782_s0 + $0xb8] sm:$0xff]  }
  0x63   : > { %531 = vst.msk [vmem:[#allocation2 + $0x6b] sm:$0xff] %vm351_vm0, %v529_v39  ;;  %v545_v30 = vsel %vm351_vm0, %v1741_v37, 0.0  ;;  %v547_v62 = vsel %vm351_vm0, %v1745_v41, 0.0  ;;  %1302 = vmatpush2.bf16.msra.mxu1 %v1859_v29  ;;  %v711_v41 = vor.u32 %v710_v10, %v709_v6  ;;  %v714_v59 = vor.u32 %v713_v26, %v712_v22 }
  0x64   : > { %v796_v31 = vrot.slane %v2463_v24, 1  ;;  %v797_v32 = vrot.slane %v2465_v25, 1  ;;  %v2482_v35 = vshrl.u32 %v2463_v24, 16  ;;  %v2485_v0 = vshll.u32 %v2463_v24, 16  ;;  %1303 = vmatprep.subr.bf16.mxu1 %v1983_v2 }
  0x65   : > { %v2489_v60 = vshll.u32 %v2465_v25, 16  ;;  %v820_v20 = vshrl.u32 %v2465_v25, 16  ;;  %v844_v50 = vrot.slane %v2463_v24, 2  ;;  %v845_v51 = vrot.slane %v2465_v25, 2 }
  0x66   : > { %v798_v43 = vsel %vm635_vm3, %v796_v31, %v797_v32  ;;  %697 = vrot.lane.b32.xlu1 %v691_v5, %s1984_s11  ;;  %v817_v44 = vrot.slane %v2482_v35, 1  ;;  %v818_v45 = vrot.slane %v2485_v0, 2  ;;  %v863_v53 = vrot.slane %v2482_v35, 2 }
  0x67   : > { %804 = vrot.lane.b32.xlu0 %v798_v43, %s1988_s16  ;;  %v822_v48 = vrot.slane %v820_v20, 1  ;;  %v823_v3 = vrot.slane %v2489_v60, 2  ;;  %v864_v11 = vrot.slane %v2485_v0, 3  ;;  %v541_v55 = vadd.f32 %v540_v27, %v539_v38  ;;  %1304 = vmatpush2.bf16.msra.mxu1 %v1861_v18 }
  0x68   : > { %v819_v49 = vor.u32 %v818_v45, %v817_v44  ;;  %v544_v46 = vadd.f32 %v543_v42, %v542_v28  ;;  %v760_v63 = vor.u32 %v759_v47, %v2292_v17  ;;  %v764_v61 = vrot.slane %v2301_v21, 1  ;;  %1305 = vmatprep.subr.bf16.mxu1 %v1983_v2 }
  0x69   : > { %v824_v7 = vor.u32 %v823_v3, %v822_v48  ;;  %v568_v37 = vld [vmem:[#allocation2 + $0x60] sm:$0xff]  ;;  %v866_v9 = vrot.slane %v820_v20, 2  ;;  %v846_v6 = vsel %vm685_vm2, %v844_v50, %v845_v51  ;;  %v549_v10 = vadd.f32 %v541_v55, %v533_v54  ;;  %v1867_v20 = vld [vmem:[%s2782_s0 + $0xb0] sm:$0xff]  }
  0x6a   : > { %v569_v56 = vld [vmem:[#allocation2 + $0x68] sm:$0xff]  ;;  %v570_v58 = vld [vmem:[#allocation2 + $0x70] sm:$0x3f]  ;;  %v546_v17 = vadd.f32 %v545_v30, %v544_v46  ;;  %v2532_v21 = vsel %vm586_vm5, %v760_v63, %v764_v61  ;;  %v867_v16 = vrot.slane %v2489_v60, 3  ;;  %v865_v1 = vor.u32 %v864_v11, %v863_v53 }
  0x6b   : > { %v825_v36 = vsel %vm651_vm6, %v819_v49, %v824_v7  ;;  %v2522_v40 = vpack.c.bf16 %v569_v56, %v568_v37  ;;  %v2524_v8 = vpack.c.bf16 %v570_v58, %v570_v58  ;;  %551 = vst.msk [vmem:[#allocation2 + $0x7b] sm:$0xff] %vm351_vm0, %v549_v10  ;;  %1306 = vmatpush2.bf16.msra.mxu1 %v1863_v4  ;;  %v733_v42 = vrot.slane %v2332_v52, 3 }
  0x6c   : > { %837 = vrot.lane.b32.xlu0 %v825_v36, %s1985_s12  ;;  %v548_v33 = vadd.f32 %v547_v62, %v546_v17  ;;  %v715_v19 = vsel %vm701_vm7, %v711_v41, %v714_v59  ;;  %1307 = vmatprep.subr.bf16.mxu1 %v1983_v2  ;;  %v868_v27 = vor.u32 %v867_v16, %v866_v9  ;;  %v734_v43 = vrot.slane %v2341_v57, 3 }
  0x6d   : > { %v2535_v13 = vshrl.u32 %v2522_v40, 16  ;;  %v2538_v14 = vshll.u32 %v2522_v40, 16  ;;  %v2541_v15 = vshll.u32 %v2524_v8, 16  ;;  %v642_v28 = vrot.slane %v2522_v40, 1 }
  0x6e   : > { %v550_v5 = vadd.f32 %v548_v33, %v534_v12  ;;  %v643_v29 = vrot.slane %v2524_v8, 1  ;;  %v673_v32 = vshrl.u32 %v2524_v8, 16  ;;  %v869_v38 = vsel %vm701_vm7, %v865_v1, %v868_v27 }
  0x6f   : > { %v616_v39 = vrot.slane %v2538_v14, 1  ;;  %v621_v22 = vrot.slane %v2541_v15, 1  ;;  %1308 = vmatpush2.bf16.msra.mxu1 %v1865_v23  ;;  %v670_v45 = vrot.slane %v2535_v13, 1  ;;  %v771_v47 = vrot.slane %v2485_v0, 1 }
  0x70   : > { %852 = vrot.lane.b32.xlu0 %v846_v6, %s1987_s8  ;;  %552 = vst.msk [vmem:[#allocation2 + $0x83] sm:$0xff] %vm351_vm0, %v550_v5  ;;  %v644_v44 = vsel %vm635_vm3, %v642_v28, %v643_v29  ;;  %1309 = vmatprep.subr.bf16.mxu1 %v1983_v2  ;;  %v671_v3 = vrot.slane %v2538_v14, 2  ;;  %v675_v30 = vrot.slane %v673_v32, 1  ;;  %v676_v62 = vrot.slane %v2541_v15, 2 }
  0x71   : > { %v617_v26 = vor.u32 %v616_v39, %v2535_v13  ;;  %v776_v18 = vrot.slane %v2489_v60, 1  ;;  %v772_v57 = vor.u32 %v771_v47, %v2482_v35  ;;  %v735_v49 = vsel %vm729_vm4, %v733_v42, %v734_v43 }
  0x72   : > { %v571_v48 = vld [vmem:[#allocation2 + $0x78] sm:$0xff]  ;;  %v886_v50 = vrot.slane %v2463_v24, 3  ;;  %v887_v0 = vrot.slane %v2465_v25, 3  ;;  %v672_v37 = vor.u32 %v671_v3, %v670_v45  ;;  %v677_v11 = vor.u32 %v676_v62, %v675_v30 }
  0x73   : > { %v622_v31 = vsel %vm586_vm5, %v617_v26, %v621_v22  ;;  %1310 = vmatpush2.bf16.msra.mxu1 %v1867_v20  ;;  %v2584_v60 = vsel %vm586_vm5, %v772_v57, %v776_v18  ;;  %v692_v36 = vrot.slane %v2522_v40, 2  ;;  %v693_v9 = vrot.slane %v2524_v8, 2 }
  0x74   : > { %627 = vrot.lane.b32.xlu1 %v622_v31, %s1988_s16  ;;  %725 = vrot.lane.b32.xlu0 %v715_v19, %s1989_s10  ;;  %v888_v25 = vsel %vm729_vm4, %v886_v50, %v887_v0  ;;  %v678_v6 = vsel %vm651_vm6, %v672_v37, %v677_v11  ;;  %v716_v10 = vrot.slane %v2535_v13, 2  ;;  %v717_v16 = vrot.slane %v2538_v14, 3 }
  0x75   : > { %v719_v39 = vrot.slane %v673_v32, 2  ;;  %v720_v22 = vrot.slane %v2541_v15, 3  ;;  %v694_v31 = vsel %vm685_vm2, %v692_v36, %v693_v9  ;;  %v737_v45 = vrot.slane %v2524_v8, 3  ;;  %v1856_v9 = vld [vmem:[%s2782_s0 + $0x110] sm:$0xff]  }
  0x76   : > { %v718_v15 = vor.u32 %v717_v16, %v716_v10  ;;  %v1860_v16 = vld [vmem:[%s2782_s0 + $0x100] sm:$0xff]  }
  0x77   : > { %v572_v51 = vld [vmem:[#allocation2 + $0x80] sm:$0xff]  ;;  %v573_v53 = vld [vmem:[#allocation2 + $0x88] sm:$0x3f]  ;;  %v721_v32 = vor.u32 %v720_v22, %v719_v39  ;;  %v1862_v39 = vld [vmem:[%s2782_s0 + $0xf8] sm:$0xff]  }
  0x78   : > { %879 = vrot.lane.b32.xlu1 %v869_v38, %s1984_s11  ;;  %649 = vrot.lane.b32.xlu0 %v644_v44, %s1985_s12  ;;  %v2581_v54 = vpack.c.bf16 %v572_v51, %v571_v48  ;;  %v585_v7 = vpack.c.bf16 %v573_v53, %v573_v53  ;;  %v736_v44 = vrot.slane %v2522_v40, 3 }
  0x79   : > { %v722_v43 = vsel %vm701_vm7, %v718_v15, %v721_v32 }
  0x7a   : > { %v799_v35 = vrot.slane %v2581_v54, 1  ;;  %v800_v41 = vrot.slane %v585_v7, 1  ;;  %v779_v55 = vshrl.u32 %v2581_v54, 16  ;;  %v781_v56 = vshll.u32 %v2581_v54, 16 }
  0x7b   : > { %v786_v58 = vshll.u32 %v585_v7, 16  ;;  %v829_v59 = vshrl.u32 %v585_v7, 16  ;;  %v847_v19 = vrot.slane %v2581_v54, 2  ;;  %v848_v5 = vrot.slane %v585_v7, 2 }
  0x7c   : > { %741 = vrot.lane.b32.xlu1 %v735_v49, %s1986_s27  ;;  %v801_v46 = vsel %vm635_vm3, %v799_v35, %v800_v41  ;;  %v826_v63 = vrot.slane %v779_v55, 1  ;;  %v827_v61 = vrot.slane %v781_v56, 2  ;;  %v783_v23 = vrot.slane %v781_v56, 1 }
  0x7d   : > { %806 = vrot.lane.b32.xlu0 %v801_v46, %s1988_s16  ;;  %v831_v12 = vrot.slane %v829_v59, 1  ;;  %v832_v4 = vrot.slane %v786_v58, 2  ;;  %v788_v1 = vrot.slane %v786_v58, 1  ;;  %v870_v26 = vrot.slane %v779_v55, 2 }
  0x7e   : > { %v828_v17 = vor.u32 %v827_v61, %v826_v63  ;;  %v784_v27 = vor.u32 %v783_v23, %v779_v55  ;;  %v871_v28 = vrot.slane %v781_v56, 3  ;;  %v873_v14 = vrot.slane %v829_v59, 2 }
  0x7f   : > { %v833_v33 = vor.u32 %v832_v4, %v831_v12  ;;  %v874_v29 = vrot.slane %v786_v58, 3  ;;  %v849_v38 = vsel %vm685_vm2, %v847_v19, %v848_v5  ;;  %v889_v48 = vrot.slane %v2581_v54, 3 }
  0x80   : > { %894 = vrot.lane.b32.xlu1 %v888_v25, %s1989_s10  ;;  %v2607_v20 = vsel %vm586_vm5, %v784_v27, %v788_v1  ;;  %v872_v42 = vor.u32 %v871_v28, %v870_v26  ;;  %v890_v3 = vrot.slane %v585_v7, 3  ;;  %v738_v30 = vsel %vm729_vm4, %v736_v44, %v737_v45  ;;  %v1864_v1 = vld [vmem:[%s2782_s0 + $0xf0] sm:$0xff]   ;;  %v1866_v26 = vld [vmem:[%s2782_s0 + $0xe8] sm:$0xff]   ;;  %v1870_v44 = vld [vmem:[%s2782_s0 + $0x140] sm:$0xff]  }
  0x81   : > { %683 = vrot.lane.b32.xlu0 %v678_v6, %s1987_s8  ;;  %v834_v13 = vsel %vm651_vm6, %v828_v17, %v833_v33  ;;  %v1858_v6 = vld [vmem:[%s2782_s0 + $0x108] sm:$0xff]  }
  0x82   : > { %v891_v62 = vsel %vm729_vm4, %v889_v48, %v890_v3 }
  0x84   : > { %750 = vrot.lane.b32.xlu1 %v2463_v24, %s1990_s24  ;;  %v875_v24 = vor.u32 %v874_v29, %v873_v14 }
  0x85   : > { %839 = vrot.lane.b32.xlu0 %v834_v13, %s1985_s12  ;;  %v1868_v13 = vld [vmem:[%s2782_s0 + $0xe0] sm:$0xff]   ;;  %s310_s12 = sand.u32 1, %s1962_s19  }
  0x86   : > { %v876_v47 = vsel %vm701_vm7, %v872_v42, %v875_v24  ;;  %s2737_s13 = scalar_lea.sflag [#allocation4], %s310_s12 }
  0x88   : > { %699 = vrot.lane.b32.xlu1 %v694_v31, %s1984_s11 }
  0x89   : > { %854 = vrot.lane.b32.xlu0 %v849_v38, %s1987_s8  ;;  %v1869_v38 = vld [vmem:[%s2782_s0 + $0x148] sm:$0xff]   ;;  %s1697_s8 = sshll.u32 %s1970_s21, 8 }
  0x8a   : > { %s2732_s9 = scalar_lea.hbm %s2787_s5, %s1697_s8 }
  0x8c   : > { %727 = vrot.lane.b32.xlu1 %v722_v43, %s1989_s10 }
  0x8d   : > { %881 = vrot.lane.b32.xlu0 %v876_v47, %s1984_s11  ;;  %s1686_s11 = sld [smem:[#allocation3 + $0x2]] }
  0x90   : > { %743 = vrot.lane.b32.xlu1 %v738_v30, %s1986_s27  ;;  %s1633_s27 = sshll.u32 %s310_s12, 4 }
  0x91   : > { %896 = vrot.lane.b32.xlu0 %v891_v62, %s1989_s10  ;;  %s312_s16 = scalar_lea.vmem [#allocation6], %s1633_s27 }
  0x92   : > { %s1493_s10 = sshll.u32 %s312_s16, 4  ;;  %s2734_s10 = int_to_ptr.vmem [resolvable:$true] %s1493_s10 }
  0x93   : > { %s1898_s21 = scalar_lea.vmem %s2734_s10, 256  ;;  %p1905_p0 = scmp.lt.s32.totalorder %s2734_s10, %s1903_s15 }
  0x94   : > { %752 = vrot.lane.b32.xlu1 %v2581_v54, %s1990_s24  ;;  %p1899_p10 = scmp.ne.s32.totalorder %s2734_s10, %s1898_s21  ;;  %p1906_p1 = scmp.lt.s32.totalorder %s1904_s17, %s1898_s21 }
  0x96   : > { %p1900_p11 = pnand %p1899_p10, %p2064_p4  ;;  %p1907_p2 = por %p1906_p1, %p1905_p0 }
  0x98   : > { %p1901_p13 = pneg %p1900_p11 }
  0x9a   : > { %p1908_p3 = pnand %p1907_p2, %p1901_p13 }
  0xb8   : > { %v696_v8 = vpop.permute.xlu1 %695  ;;  %v646_v18 = vpop.permute.xlu0 %645 }
  0xbc   : > { %v740_v57 = vpop.permute.xlu1 %739 }
  0xbe   : > { %v851_v49 = vpop.permute.xlu0 %850 }
  0xc0   : > { %v803_v50 = vpop.permute.xlu1 %802 }
  0xc1   : > { %v951_v35 = vsel %vm351_vm0, %v2532_v21, %v803_v50  ;;  %v1854_v21 = vld [vmem:[%s2782_s0 + $0x118] sm:$0xff]   ;;  %v1872_v50 = vld [vmem:[%s2782_s0 + $0x130] sm:$0xff]  }
  0xc2   : > { %v624_v0 = vpop.permute.xlu0 %623 }
  0xc3   : > { %v899_v51 = vsel %vm351_vm0, %v2221_v34, %v624_v0 }
  0xc4   : > { %v680_v53 = vpop.permute.xlu1 %679  ;;  %v906_v7 = vsel %vm904_vm8, %v899_v51, %v646_v18 }
  0xc5   : > { %v913_v37 = vsel %vm911_vm9, %v906_v7, %v680_v53  ;;  %v1873_v53 = vld [vmem:[%s2782_s0 + $0x128] sm:$0xff]  }
  0xc6   : > { %v836_v11 = vpop.permute.xlu0 %835  ;;  %v920_v41 = vsel %vm918_vm10, %v913_v37, %v696_v8  ;;  %v1871_v8 = vld [vmem:[%s2782_s0 + $0x138] sm:$0xff]  }
  0xc7   : > { %v959_v55 = vsel %vm904_vm8, %v951_v35, %v836_v11  ;;  %v1874_v35 = vld [vmem:[%s2782_s0 + $0x120] sm:$0xff]  }
  0xc8   : > { %v724_v54 = vpop.permute.xlu1 %723  ;;  %v965_v58 = vsel %vm911_vm9, %v959_v55, %v851_v49 }
  0xc9   : > { %v927_v56 = vsel %vm925_vm11, %v920_v41, %v724_v54 }
  0xca   : > { %v878_v34 = vpop.permute.xlu0 %877  ;;  %v934_v59 = vsel %vm932_vm12, %v927_v56, %v740_v57 }
  0xcb   : > { %v971_v46 = vsel %vm918_vm10, %v965_v58, %v878_v34 }
  0xcc   : > { %v749_v25 = vpop.permute.xlu1 %748 }
  0xcd   : > { %v941_v61 = vsel %vm939_vm13, %v934_v59, %v749_v25 }
  0xce   : > { %v893_v63 = vpop.permute.xlu0 %892 }
  0xcf   : > { %v977_v36 = vsel %vm925_vm11, %v971_v46, %v893_v63 }
  0xd0   : > { %1654 = vmatprep.mubr.msk.bf16.mxu0 %vm932_vm12, %v977_v36  ;;  %v648_v4 = vpop.permute.xlu1 %647 }
  0xd1   : > { %1185 = vmatmul.mubr.bf16.vlgmr.msra.gmra.mxu0 %v941_v61 }
  0xd2   : > { %1407 = vmatpush1.bf16.msra.mxu0 %v1854_v21  ;;  %v626_v12 = vpop.permute.xlu0 %625 }
  0xd3   : > { %1408 = vmatprep.subr.bf16.mxu0 %v1983_v2  ;;  %v901_v28 = vsel %vm351_vm0, %v2332_v52, %v626_v12 }
  0xd4   : > { %v682_v10 = vpop.permute.xlu1 %681  ;;  %v908_v31 = vsel %vm904_vm8, %v901_v28, %v648_v4 }
  0xd5   : > { %v915_v52 = vsel %vm911_vm9, %v908_v31, %v682_v10  ;;  %v1452_v10 = vstv %s1685_s25 }
  0xd6   : > { %1409 = vmatpush1.bf16.msra.mxu0 %v1856_v9 }
  0xd7   : > { %1410 = vmatprep.subr.bf16.mxu0 %v1983_v2 }
  0xd8   : > { %v698_v22 = vpop.permute.xlu1 %697 }
  0xd9   : > { %v805_v17 = vpop.permute.xlu0 %804  ;;  %v922_v47 = vsel %vm918_vm10, %v915_v52, %v698_v22 }
  0xda   : > { %1411 = vmatpush1.bf16.msra.mxu0 %v1858_v6  ;;  %v954_v14 = vsel %vm351_vm0, %v2584_v60, %v805_v17 }
  0xdb   : > { %1412 = vmatprep.subr.bf16.mxu0 %v1983_v2 }
  0xde   : > { %v838_v33 = vpop.permute.xlu0 %837  ;;  %1413 = vmatpush1.bf16.msra.mxu0 %v1860_v16  ;;  %v1448_v16 = vstv %s1447_s29 }
  0xdf   : > { %1414 = vmatprep.subr.bf16.mxu0 %v1983_v2  ;;  %v961_v15 = vsel %vm904_vm8, %v954_v14, %v838_v33 }
  0xe2   : > { %v853_v23 = vpop.permute.xlu0 %852  ;;  %1415 = vmatpush1.bf16.msra.mxu0 %v1862_v39 }
  0xe3   : > { %1416 = vmatprep.subr.bf16.mxu0 %v1983_v2  ;;  %v967_v42 = vsel %vm911_vm9, %v961_v15, %v853_v23 }
  0xe6   : > { %v628_v19 = vpop.permute.xlu1 %627  ;;  %v726_v5 = vpop.permute.xlu0 %725  ;;  %1417 = vmatpush1.bf16.msra.mxu0 %v1864_v1  ;;  %v1456_v1 = vstv %s1686_s11 }
  0xe7   : > { %1418 = vmatprep.subr.bf16.mxu0 %v1983_v2  ;;  %v929_v48 = vsel %vm925_vm11, %v922_v47, %v726_v5  ;;  %v903_v7 = vsel %vm351_vm0, %v2522_v40, %v628_v19 }
  0xea   : > { %v880_v27 = vpop.permute.xlu1 %879  ;;  %1419 = vmatpush1.bf16.msra.mxu0 %v1866_v26  ;;  %v650_v29 = vpop.permute.xlu0 %649 }
  0xeb   : > { %1420 = vmatprep.subr.bf16.mxu0 %v1983_v2  ;;  %v973_v24 = vsel %vm918_vm10, %v967_v42, %v880_v27  ;;  %v910_v41 = vsel %vm904_vm8, %v903_v7, %v650_v29 }
  0xee   : > { %v742_v32 = vpop.permute.xlu1 %741  ;;  %1421 = vmatpush1.bf16.msra.mxu0 %v1868_v13 }
  0xef   : > { %1426 = vmatprep.subr.bf16.mxu0 %v1983_v2  ;;  %v807_v60 = vpop.permute.xlu0 %806  ;;  %v936_v30 = vsel %vm932_vm12, %v929_v48, %v742_v32 }
  0xf0   : > { %v957_v37 = vsel %vm351_vm0, %v2607_v20, %v807_v60 }
  0xf2   : > { %v895_v43 = vpop.permute.xlu1 %894  ;;  %1427 = vmatpush2.bf16.msra.mxu0 %v1869_v38 }
  0xf3   : > { %v979_v45 = vsel %vm925_vm11, %v973_v24, %v895_v43  ;;  %1428 = vmatprep.subr.bf16.mxu0 %v1983_v2  ;;  %v684_v3 = vpop.permute.xlu0 %683 }
  0xf4   : > { %1669 = vmatprep.mubr.msk.bf16.mxu1 %vm932_vm12, %v979_v45  ;;  %v917_v56 = vsel %vm911_vm9, %v910_v41, %v684_v3 }
  0xf6   : > { %v751_v62 = vpop.permute.xlu1 %750  ;;  %1429 = vmatpush2.bf16.msra.mxu0 %v1870_v44 }
  0xf7   : > { %v944_v18 = vsel %vm939_vm13, %v936_v30, %v751_v62  ;;  %1430 = vmatprep.subr.bf16.mxu0 %v1983_v2  ;;  %v840_v57 = vpop.permute.xlu0 %839 }
  0xf8   : > { %1312 = vmatmul.mubr.bf16.vlgmr.msra.gmra.mxu1 %v944_v18  ;;  %v963_v55 = vsel %vm904_vm8, %v957_v37, %v840_v57 }
  0xfa   : > { %v700_v49 = vpop.permute.xlu1 %699  ;;  %1431 = vmatpush2.bf16.msra.mxu0 %v1871_v8 }
  0xfb   : > { %1432 = vmatprep.subr.bf16.mxu0 %v1983_v2  ;;  %v855_v0 = vpop.permute.xlu0 %854  ;;  %v924_v34 = vsel %vm918_vm10, %v917_v56, %v700_v49 }
  0xfc   : > { %v969_v40 = vsel %vm911_vm9, %v963_v55, %v855_v0 }
  0xfe   : > { %v728_v51 = vpop.permute.xlu1 %727  ;;  %1433 = vmatpush2.bf16.msra.mxu0 %v1872_v50 }
  0xff   : > { %1434 = vmatprep.subr.bf16.mxu0 %v1983_v2  ;;  %v882_v11 = vpop.permute.xlu0 %881  ;;  %v931_v58 = vsel %vm925_vm11, %v924_v34, %v728_v51 }
 0x100   : > { %v975_v20 = vsel %vm918_vm10, %v969_v40, %v882_v11 }
 0x102   : > { %v744_v54 = vpop.permute.xlu1 %743  ;;  %1435 = vmatpush2.bf16.msra.mxu0 %v1873_v53 }
 0x103   : > { %1436 = vmatprep.subr.bf16.mxu0 %v1983_v2  ;;  %v897_v25 = vpop.permute.xlu0 %896  ;;  %v938_v63 = vsel %vm932_vm12, %v931_v58, %v744_v54 }
 0x104   : > { %v981_v46 = vsel %vm925_vm11, %v975_v20, %v897_v25 }
 0x105   : > { %1684 = vmatprep.mubr.msk.bf16.mxu0 %vm932_vm12, %v981_v46 }
 0x106   : > { %v753_v59 = vpop.permute.xlu1 %752  ;;  %1437 = vmatpush2.bf16.msra.mxu0 %v1874_v35 }
 0x107   : > { %v947_v2 = vsel %vm939_vm13, %v938_v63, %v753_v59 }
 0x109   : > { %1439 = vmatmul.mubr.bf16.vlgmr.msra.gmra.mxu0 %v947_v2 }
 0x191   : > { %v1186_v61 = vpop.f32.mrf.mxu0 }
 0x192   : > { %v1449_v39 = vadd.f32 %v1448_v16, %v1186_v61 }
 0x193   : > { %v1188_v21 = vpop.f32.mrf.mxu0 }
 0x195   : > { %v1189_v36 = vpop.f32.mrf.mxu0 }
 0x196   : > { %v1450_v19 = vadd.f32 %v1448_v16, %v1189_v36 }
 0x197   : > { %v1191_v9 = vpop.f32.mrf.mxu0 }
 0x1b8   : > { %v1313_v12 = vpop.f32.mrf.mxu1 }
 0x1b9   : > { %v1453_v33 = vadd.f32 %v1452_v10, %v1313_v12 }
 0x1ba   : > { %v1315_v4 = vpop.f32.mrf.mxu1 }
 0x1bb   : > { %v1459_v22 = vadd.f32 %v1453_v33, %v1449_v39 }
 0x1bc   : > { %v1316_v6 = vpop.f32.mrf.mxu1 }
 0x1bd   : > { %v1454_v23 = vadd.f32 %v1452_v10, %v1316_v6  ;;  %v1461_v26 = vadd.f32 1.0, %v1459_v22 }
 0x1be   : > { %v1318_v17 = vpop.f32.mrf.mxu1 }
 0x1bf   : > { %v1460_v27 = vadd.f32 %v1454_v23, %v1450_v19 }
 0x1c1   : > { %v1462_v31 = vadd.f32 1.0, %v1460_v27 }
 0x1c9   : > { %v1440_v5 = vpop.f32.mrf.mxu0 }
 0x1ca   : > { %v1457_v13 = vadd.f32 %v1456_v1, %v1440_v5 }
 0x1cb   : > { %v1442_v28 = vpop.f32.mrf.mxu0 }
 0x1cc   : > { %v1463_v14 = vmul.f32 %v1461_v26, %v1457_v13 }
 0x1cd   : > { %v1443_v29 = vpop.f32.mrf.mxu0 }
 0x1ce   : > { %v1687_v15 = vmul.f32 -1.442695, %v1463_v14  ;;  %v1458_v32 = vadd.f32 %v1456_v1, %v1443_v29 }
 0x1cf   : > { %v1445_v38 = vpop.f32.mrf.mxu0 }
 0x1d0   : > { %1875 = vpow2.f32 %v1687_v15  ;;  %v1464_v52 = vmul.f32 %v1462_v31, %v1458_v32 }
 0x1d2   : > { %v1688_v42 = vmul.f32 -1.442695, %v1464_v52 }
 0x1d4   : > { %1877 = vpow2.f32 %v1688_v42 }
 0x1dd   : > { %v1876_v60 = vpop.eup %1875 }
 0x1de   : > { %v1471_v24 = vadd.f32 1.0, %v1876_v60 }
 0x1e0   : > { %1879 = vrcp.f32 %v1471_v24 }
 0x1e1   : > { %v1878_v43 = vpop.eup %1877 }
 0x1e2   : > { %v1472_v44 = vadd.f32 1.0, %v1878_v43 }
 0x1e4   : > { %1881 = vrcp.f32 %v1472_v44 }
 0x1ed   : > { %v1880_v45 = vpop.eup %1879 }
 0x1ee   : > { %1477 = vst.msk [vmem:[%s312_s16] sm:$0xff] %vm351_vm0, %v1880_v45 }
 0x1f1   : > { %v1882_v47 = vpop.eup %1881 }
 0x1f2   : > { %1478 = vst.msk [vmem:[%s312_s16 + $0x8] sm:$0xff] %vm351_vm0, %v1882_v47 }
 0x1f3   : > { %1911 = shalt.err (!%p1908_p3)
}
 0x1f4   : > { %s1912_s25 = scalar_lea.hbm %s2732_s9, 256  ;;  %s1916_s12 = scalar_lea.hbm %s2787_s5, 512 }
 0x1f5   : > { %p1913_p5 = scmp.ne.s32.totalorder %s2732_s9, %s1912_s25  ;;  %p1917_p9 = scmp.lt.s32.totalorder %s2732_s9, %s2787_s5 }
 0x1f6   : > { %p1918_p12 = scmp.lt.s32.totalorder %s1916_s12, %s1912_s25 }
 0x1f7   : > { %p1914_p6 = pnand %p1913_p5, %p2064_p4 }
 0x1f8   : > { %p1919_p10 = por %p1918_p12, %p1917_p9 }
 0x1f9   : > { %p1915_p7 = pneg %p1914_p6 }
 0x1fb   : > { %p1920_p11 = pnand %p1919_p10, %p1915_p7 }
 0x1fd   : > { %1923 = shalt.err (!%p1920_p11)
}
 0x1fe   : > { %s1992_s16 = smov 128   ;;  %s1993_s24 = smov 8  }
 0x1ff   : > { %1759 = dma.vmem_to_hbm [thread:$0]  (%p2064_p4), %s2734_s10, 256, %s2732_s9, %s2737_s13, %s1992_s16, %s1992_s16, %s1993_s24  }
 0x200 PF: > { %p1771_p13 = scmp.ge.s32.totalorder %s1978_s23, 2  ;;  %s1508_s7 = sand.u32 1, %s1958_s18  }
 0x201   : > { %s1509_s21 = scalar_lea.sflag [#allocation4], %s1508_s7 }
 0x202   : > { %p1766_p0 = pnand %p1771_p13, %p2071_p8 }
 0x204   : > { %p1767_p1 = pneg %p1766_p0 }
 0x206   : > { %1953 = dma.done.wait (%p1767_p1), %s1509_s21, 256  }
 0x207   : > { %1955 = vsyncadd (%p1767_p1), %s1509_s21, 4294967040  ;;  %s19_s23 = sadd.s32 1, %s1978_s23   ;;  %s2792_s18 = smov %s1962_s19 }
 0x208   : > { %p16_p2 = scmp.ge.s32.totalorder %s19_s23, 4   ;;  %s2793_s19 = smov %s1966_s20 }
 0x209   : > { %s2794_s20 = smov %s2077_s6  ;;  %s2795_s21 = smov %s1974_s22 }
 0x20a   : > { %s2796_s22 = smov %s2798_s26  ;;  %18 = sbr.rel (!%p16_p2) target bundleno = 5 (0x5), region = 101 }
 0x20f   :  { %1514 = vsyncpa [#allocation4], 1 }
 0x210   :  { %1516 = vsyncpa [#allocation4 + $0x1], 1 }
 0x211   :  { %1517 = vsyncpa [#allocation5], 1 }
 0x212   :  { %1519 = vsyncpa [#allocation5 + $0x1], 1 }

</bundles_post_ra>
